<compile_context>
chip_gen: v7x
topology: tpu7x:2x2x1
jax: 0.10.0
libtpu: 0.0.40
codegen_flags: <defaults>
</compile_context>

<pallas_src>
import functools

import jax
import jax.numpy as jnp
from jax.experimental import pallas as pl
from jax.experimental.pallas import tpu as pltpu

EPS = 1e-5           # nn.InstanceNorm2d default eps
LEAKY_SLOPE = 0.01   # nn.LeakyReLU(0.01)


# ---------------------------------------------------------------------------
# In-kernel helpers
# ---------------------------------------------------------------------------
def _spatial_masks(L, H, W):
    """Per-image border masks over the merged (batch*spatial) lane axis, shape (1, L)."""
    HW = H * W
    lane = jax.lax.broadcasted_iota(jnp.int32, (1, L), 1)
    hw = lane % HW                      # position within the image
    col = lane % W                      # column (HW % W == 0, so this is per-image)
    first_row = hw < W
    last_row = hw >= HW - W
    first_col = col == 0
    last_col = col == W - 1
    return first_row, last_row, first_col, last_col


def _conv3x3_reflect(y, w_mat, b, masks, W):
    """3x3 conv with implicit ReflectionPad2d(1) as one im2col matmul.

    y:     (Cin, L) f32, L = TN*H*W, spatial flattened row-major per image
    w_mat: (Cout, 9*Cin), tap-major (tap = kh*3+kw), cin-minor, conv dtype
    b:     (Cout, 1) f32
    Every lane where a circular roll would cross an image boundary is exactly a
    first/last row/col lane, and those lanes are overridden by the reflection masks.
    """
    first_row, last_row, first_col, last_col = masks
    L = y.shape[-1]
    cdt = w_mat.dtype

    def col_taps(t):
        left = pltpu.roll(t, shift=1, axis=1)        # value at column j-1
        right = pltpu.roll(t, shift=L - 1, axis=1)   # value at column j+1
        t0 = jnp.where(first_col, right, left)       # kw=0: reflect j=-1 -> j=1
        t2 = jnp.where(last_col, left, right)        # kw=2: reflect j=W  -> j=W-2
        return t0, t, t2

    up = pltpu.roll(y, shift=W, axis=1)              # value at row i-1
    dn = pltpu.roll(y, shift=L - W, axis=1)          # value at row i+1
    r0 = jnp.where(first_row, dn, up)                # kh=0: reflect i=-1 -> i=1
    r2 = jnp.where(last_row, up, dn)                 # kh=2: reflect i=H  -> i=H-2

    taps = []
    for r in (r0, y, r2):                            # kh = 0, 1, 2
        for t in col_taps(r):                        # kw = 0, 1, 2
            taps.append(t.astype(cdt))               # narrow BEFORE the concat
    patches = jnp.concatenate(taps, axis=0)          # (9*Cin, L), conv dtype

    out = jax.lax.dot_general(                       # one MXU matmul, f32 accumulation
        w_mat, patches,
        dimension_numbers=(((1,), (0,)), ((), ())),
        preferred_element_type=jnp.float32)          # (Cout, L)
    return out + b


def _instance_norm(y, TN, HW):
    """InstanceNorm2d(affine=False): per-(channel, image) biased variance, one pass."""
    C, L = y.shape
    y3 = y.reshape(C, TN, HW) if TN > 1 else y
    inv = 1.0 / HW
    mean = jnp.sum(y3, axis=-1, keepdims=True) * inv
    mean_sq = jnp.sum(y3 * y3, axis=-1, keepdims=True) * inv
    var = mean_sq - mean * mean
    y3 = (y3 - mean) * jax.lax.rsqrt(var + EPS)
    return y3.reshape(C, L) if TN > 1 else y3


# ---------------------------------------------------------------------------
# Pallas kernel: full residual block for TN batch elements
# ---------------------------------------------------------------------------
def residual_block_kernel(x_ref, w1_ref, b1_ref, w2_ref, b2_ref, o_ref, *, H, W, TN):
    HW = H * W
    x = x_ref[...].astype(jnp.float32)               # (C, TN*HW), lane-dense
    masks = _spatial_masks(x.shape[-1], H, W)

    # ReflectionPad2d(1) -> Conv2d -> InstanceNorm2d -> LeakyReLU
    y = _conv3x3_reflect(x, w1_ref[...], b1_ref[...], masks, W)
    y = _instance_norm(y, TN, HW)
    y = jnp.maximum(y, LEAKY_SLOPE * y)

    # ReflectionPad2d(1) -> Conv2d -> InstanceNorm2d
    y = _conv3x3_reflect(y, w2_ref[...], b2_ref[...], masks, W)
    y = _instance_norm(y, TN, HW)

    # residual add; lane-dense (C, TN*HW) store
    o_ref[...] = (x + y).astype(o_ref.dtype)


# ---------------------------------------------------------------------------
# Planning: batch-tile size and VMEM limit from the actual block footprint
# ---------------------------------------------------------------------------
def _plan(N, C, HW, x_bytes, conv_bytes):
    patches = 9 * C * HW * conv_bytes          # im2col slab (conv dtype)
    f32_live = 4 * C * HW * 4                  # x, conv out, taps in flight (rough)
    io = 2 * 2 * C * HW * x_bytes              # in + out blocks, double buffered
    per_img = patches + f32_live + io
    budget = 40 * 1024 * 1024                  # conservative, v7x-safe working-set budget

    tn = max(1, min(N, budget // max(per_img, 1)))
    # keep >= 2 grid steps for megacore when each step already has plenty of work
    if N >= 2 and tn == N and tn * HW >= 16 * 1024:
        tn = pl.cdiv(N, 2)
    # lane-dense block constraint: block last dim must be 128-aligned unless full
    if (tn * HW) % 128 != 0 and tn != N:
        tn = N
    n_pad = pl.cdiv(N, tn) * tn

    vmem_limit = int(min(max(per_img * tn * 1.25, 32 * 1024 * 1024),
                         60 * 1024 * 1024))    # stay under v7x's 64 MiB physical
    return int(tn), int(n_pad), vmem_limit


# ---------------------------------------------------------------------------
# Wrapper
# ---------------------------------------------------------------------------
def residual_block(x_nchw, w1_oihw, b1, w2_oihw, b2, *,
                   conv_dtype=jnp.bfloat16, batch_tile=None):
    N, C, H, W = x_nchw.shape
    HW = H * W
    conv_bytes = jnp.dtype(conv_dtype).itemsize
    x_bytes = jnp.dtype(x_nchw.dtype).itemsize

    tn, n_pad, vmem_limit = _plan(N, C, HW, x_bytes, conv_bytes)
    if batch_tile is not None:                 # testing / tuning override
        tn = int(batch_tile)
        n_pad = pl.cdiv(N, tn) * tn
    L = tn * HW

    # (Cout, Cin, 3, 3) -> (Cout, 3, 3, Cin) -> (Cout, 9*Cin): tap-major, cin-minor
    def as_matrix(w):
        return jnp.transpose(w, (0, 2, 3, 1)).reshape(C, 9 * C).astype(conv_dtype)

    w1m, w2m = as_matrix(w1_oihw), as_matrix(w2_oihw)
    b1c = b1.reshape(C, 1).astype(jnp.float32)
    b2c = b2.reshape(C, 1).astype(jnp.float32)

    x_flat = x_nchw.reshape(N, C, HW)
    if n_pad != N:
        x_flat = jnp.pad(x_flat, ((0, n_pad - N), (0, 0), (0, 0)))
    # channel-major layout: batch+spatial merged into the lane axis
    x_cm = jnp.transpose(x_flat, (1, 0, 2)).reshape(C, n_pad * HW)

    grid = (n_pad // tn,)
    cost = pl.CostEstimate(
        flops=2 * 2 * 9 * C * C * HW * n_pad,              # two K=9*Cin matmuls / elem
        transcendentals=2 * C * n_pad,                      # rsqrt per (chan, image, norm)
        bytes_accessed=2 * n_pad * C * HW * x_bytes + 2 * C * 9 * C * conv_bytes + 2 * C * 4)

    out_cm = pl.pallas_call(
        functools.partial(residual_block_kernel, H=H, W=W, TN=tn),
        out_shape=jax.ShapeDtypeStruct((C, n_pad * HW), x_nchw.dtype),
        grid_spec=pltpu.PrefetchScalarGridSpec(
            num_scalar_prefetch=0,
            grid=grid,
            in_specs=[
                pl.BlockSpec((C, L), lambda i: (0, i)),
                pl.BlockSpec((C, 9 * C), lambda i: (0, 0)),
                pl.BlockSpec((C, 1), lambda i: (0, 0)),
                pl.BlockSpec((C, 9 * C), lambda i: (0, 0)),
                pl.BlockSpec((C, 1), lambda i: (0, 0)),
            ],
            out_specs=pl.BlockSpec((C, L), lambda i: (0, i)),
        ),
        compiler_params=pltpu.CompilerParams(
            dimension_semantics=("parallel",),
            vmem_limit_bytes=vmem_limit,
        ),
        cost_estimate=cost,
    )(x_cm, w1m, b1c, w2m, b2c)

    out = jnp.transpose(out_cm.reshape(C, n_pad, HW), (1, 0, 2))[:N]
    return out.reshape(N, C, H, W)


# ---------------------------------------------------------------------------
# Pure-JAX reference (mirrors the PyTorch module exactly)
# ---------------------------------------------------------------------------
def reference(x, w1, b1, w2, b2):
    def conv(y, w, b):
        ypad = jnp.pad(y, ((0, 0), (0, 0), (1, 1), (1, 1)), mode="reflect")
        out = jax.lax.conv_general_dilated(
            ypad, w, (1, 1), "VALID",
            dimension_numbers=("NCHW", "OIHW", "NCHW"),
            precision=jax.lax.Precision.HIGHEST)
        return out + b[None, :, None, None]

    def inorm(y):
        mean = jnp.mean(y, axis=(2, 3), keepdims=True)
        var = jnp.mean((y - mean) ** 2, axis=(2, 3), keepdims=True)
        return (y - mean) * jax.lax.rsqrt(var + EPS)

    y = conv(x, w1, b1)
    y = inorm(y)
    y = jnp.where(y > 0, y, LEAKY_SLOPE * y)
    y = conv(y, w2, b2)
    y = inorm(y)
    return x + y


if __name__ == "__main__":
    N, C, H, W = 2, 4, 16, 16
    key = jax.random.PRNGKey(0)
    kx, kw1, kb1, kw2, kb2 = jax.random.split(key, 5)

    x = jax.random.normal(kx, (N, C, H, W), dtype=jnp.float32)
    # Conv2d(in_features, in_features, 3) parameter shapes: (C, C, 3, 3), (C,)
    w1 = 0.1 * jax.random.normal(kw1, (C, C, 3, 3), dtype=jnp.float32)
    b1 = 0.1 * jax.random.normal(kb1, (C,), dtype=jnp.float32)
    w2 = 0.1 * jax.random.normal(kw2, (C, C, 3, 3), dtype=jnp.float32)
    b2 = 0.1 * jax.random.normal(kb2, (C,), dtype=jnp.float32)

    ref = jax.block_until_ready(reference(x, w1, b1, w2, b2))

    # Functional check with f32 conv operands (same code path, tight-ish tolerance).
    out_f32 = jax.block_until_ready(
        residual_block(x, w1, b1, w2, b2, conv_dtype=jnp.float32))
    assert out_f32.shape == (N, C, H, W)
    assert jnp.allclose(out_f32, ref, atol=1e-3, rtol=1e-3), "f32 mismatch vs reference"

    # Default bf16 conv operands (MXU-native); loose tolerance covers bf16 rounding.
    out_bf16 = jax.block_until_ready(residual_block(x, w1, b1, w2, b2))
    assert out_bf16.shape == (N, C, H, W)
    assert jnp.allclose(out_bf16, ref, atol=2e-1, rtol=2e-1), "bf16 mismatch vs reference"

    # Multi-step grid + batch-padding path (TN=2 over N=3 -> 2 grid steps, 1 pad image).
    x3 = jax.random.normal(jax.random.PRNGKey(1), (3, C, H, W), dtype=jnp.float32)
    ref3 = jax.block_until_ready(reference(x3, w1, b1, w2, b2))
    out3 = jax.block_until_ready(
        residual_block(x3, w1, b1, w2, b2, conv_dtype=jnp.float32, batch_tile=2))
    assert jnp.allclose(out3, ref3, atol=1e-3, rtol=1e-3), "padded/tiled mismatch"

    print("KERNEL_OK")
</pallas_src>

<mosaic_0001>
module attributes {stable_mosaic.version = 11 : i64} {
  func.func @residual_block_kernel(%arg0: i32, %arg1: memref<4x512xf32, #tpu.memory_space<vmem>>, %arg2: memref<4x36xf32, #tpu.memory_space<vmem>>, %arg3: memref<4x1xf32, #tpu.memory_space<vmem>>, %arg4: memref<4x36xf32, #tpu.memory_space<vmem>>, %arg5: memref<4x1xf32, #tpu.memory_space<vmem>>, %arg6: memref<4x512xf32, #tpu.memory_space<vmem>>) attributes {dimension_semantics = [#tpu.dimension_semantics<parallel>], iteration_bounds = array<i64: 1>, scalar_prefetch = 0 : i64, scratch_operands = 0 : i64, tpu.core_type = #tpu.core_type<tc>, window_params = [{transform_indices = @transform_0, window_bounds = array<i64: 4, 512>}, {pipeline_mode = #tpu.pipeline_mode<synchronous>, transform_indices = @transform_1, window_bounds = array<i64: 4, 36>}, {pipeline_mode = #tpu.pipeline_mode<synchronous>, transform_indices = @transform_2, window_bounds = array<i64: 4, 1>}, {pipeline_mode = #tpu.pipeline_mode<synchronous>, transform_indices = @transform_3, window_bounds = array<i64: 4, 36>}, {pipeline_mode = #tpu.pipeline_mode<synchronous>, transform_indices = @transform_4, window_bounds = array<i64: 4, 1>}, {transform_indices = @transform_5, window_bounds = array<i64: 4, 512>}]} {
    %c0 = arith.constant 0 : index
    %c0_0 = arith.constant 0 : index
    %0 = vector.load %arg1[%c0, %c0_0] : memref<4x512xf32, #tpu.memory_space<vmem>>, vector<4x512xf32>
    %1 = tpu.iota {dimensions = array<i32: 1>} : vector<1x512xi32>
    %c256_i32 = arith.constant 256 : i32
    %c0_i32 = arith.constant 0 : i32
    %2 = arith.cmpi eq, %c256_i32, %c0_i32 : i32
    %c1_i32 = arith.constant 1 : i32
    %3 = arith.select %2, %c1_i32, %c256_i32 : i32
    %4 = vector.broadcast %3 : i32 to vector<1x512xi32>
    %5 = arith.remsi %1, %4 : vector<1x512xi32>
    %c0_i32_1 = arith.constant 0 : i32
    %6 = vector.broadcast %c0_i32_1 : i32 to vector<1x512xi32>
    %7 = arith.cmpi ne, %5, %6 : vector<1x512xi32>
    %c0_i32_2 = arith.constant 0 : i32
    %8 = vector.broadcast %c0_i32_2 : i32 to vector<1x512xi32>
    %9 = arith.cmpi slt, %5, %8 : vector<1x512xi32>
    %c0_i32_3 = arith.constant 0 : i32
    %10 = arith.cmpi slt, %3, %c0_i32_3 : i32
    %11 = vector.broadcast %10 : i1 to vector<1x512xi1>
    %12 = vector.broadcast %11 : vector<1x512xi1> to vector<1x512xi1>
    %13 = arith.xori %9, %12 : vector<1x512xi1>
    %14 = arith.andi %13, %7 : vector<1x512xi1>
    %15 = vector.broadcast %3 : i32 to vector<1x512xi32>
    %16 = arith.addi %5, %15 : vector<1x512xi32>
    %17 = arith.select %14, %16, %5 : vector<1x512xi1>, vector<1x512xi32>
    %c16_i32 = arith.constant 16 : i32
    %c0_i32_4 = arith.constant 0 : i32
    %18 = arith.cmpi eq, %c16_i32, %c0_i32_4 : i32
    %c1_i32_5 = arith.constant 1 : i32
    %19 = arith.select %18, %c1_i32_5, %c16_i32 : i32
    %20 = vector.broadcast %19 : i32 to vector<1x512xi32>
    %21 = arith.remsi %1, %20 : vector<1x512xi32>
    %c0_i32_6 = arith.constant 0 : i32
    %22 = vector.broadcast %c0_i32_6 : i32 to vector<1x512xi32>
    %23 = arith.cmpi ne, %21, %22 : vector<1x512xi32>
    %c0_i32_7 = arith.constant 0 : i32
    %24 = vector.broadcast %c0_i32_7 : i32 to vector<1x512xi32>
    %25 = arith.cmpi slt, %21, %24 : vector<1x512xi32>
    %c0_i32_8 = arith.constant 0 : i32
    %26 = arith.cmpi slt, %19, %c0_i32_8 : i32
    %27 = vector.broadcast %26 : i1 to vector<1x512xi1>
    %28 = vector.broadcast %27 : vector<1x512xi1> to vector<1x512xi1>
    %29 = arith.xori %25, %28 : vector<1x512xi1>
    %30 = arith.andi %29, %23 : vector<1x512xi1>
    %31 = vector.broadcast %19 : i32 to vector<1x512xi32>
    %32 = arith.addi %21, %31 : vector<1x512xi32>
    %33 = arith.select %30, %32, %21 : vector<1x512xi1>, vector<1x512xi32>
    %c16_i32_9 = arith.constant 16 : i32
    %34 = vector.broadcast %c16_i32_9 : i32 to vector<1x512xi32>
    %35 = arith.cmpi slt, %17, %34 : vector<1x512xi32>
    %c240_i32 = arith.constant 240 : i32
    %36 = vector.broadcast %c240_i32 : i32 to vector<1x512xi32>
    %37 = arith.cmpi sge, %17, %36 : vector<1x512xi32>
    %c0_i32_10 = arith.constant 0 : i32
    %38 = vector.broadcast %c0_i32_10 : i32 to vector<1x512xi32>
    %39 = arith.cmpi eq, %33, %38 : vector<1x512xi32>
    %c15_i32 = arith.constant 15 : i32
    %40 = vector.broadcast %c15_i32 : i32 to vector<1x512xi32>
    %41 = arith.cmpi eq, %33, %40 : vector<1x512xi32>
    %c0_11 = arith.constant 0 : index
    %c0_12 = arith.constant 0 : index
    %42 = vector.load %arg2[%c0_11, %c0_12] : memref<4x36xf32, #tpu.memory_space<vmem>>, vector<4x36xf32>
    %c0_13 = arith.constant 0 : index
    %c0_14 = arith.constant 0 : index
    %43 = vector.load %arg3[%c0_13, %c0_14] : memref<4x1xf32, #tpu.memory_space<vmem>>, vector<4x1xf32>
    %c16_i32_15 = arith.constant 16 : i32
    %44 = tpu.dynamic_rotate %0 by %c16_i32_15 dim 1 : vector<4x512xf32>, i32 -> vector<4x512xf32>
    %c496_i32 = arith.constant 496 : i32
    %45 = tpu.dynamic_rotate %0 by %c496_i32 dim 1 : vector<4x512xf32>, i32 -> vector<4x512xf32>
    %46 = vector.shape_cast %35 : vector<1x512xi1> to vector<1x512xi1>
    %47 = vector.broadcast %46 : vector<1x512xi1> to vector<4x512xi1>
    %48 = arith.select %47, %45, %44 : vector<4x512xi1>, vector<4x512xf32>
    %49 = vector.shape_cast %37 : vector<1x512xi1> to vector<1x512xi1>
    %50 = vector.broadcast %49 : vector<1x512xi1> to vector<4x512xi1>
    %51 = arith.select %50, %44, %45 : vector<4x512xi1>, vector<4x512xf32>
    %c1_i32_16 = arith.constant 1 : i32
    %52 = tpu.dynamic_rotate %48 by %c1_i32_16 dim 1 : vector<4x512xf32>, i32 -> vector<4x512xf32>
    %c511_i32 = arith.constant 511 : i32
    %53 = tpu.dynamic_rotate %48 by %c511_i32 dim 1 : vector<4x512xf32>, i32 -> vector<4x512xf32>
    %54 = vector.shape_cast %39 : vector<1x512xi1> to vector<1x512xi1>
    %55 = vector.broadcast %54 : vector<1x512xi1> to vector<4x512xi1>
    %56 = arith.select %55, %53, %52 : vector<4x512xi1>, vector<4x512xf32>
    %57 = vector.shape_cast %41 : vector<1x512xi1> to vector<1x512xi1>
    %58 = vector.broadcast %57 : vector<1x512xi1> to vector<4x512xi1>
    %59 = arith.select %58, %52, %53 : vector<4x512xi1>, vector<4x512xf32>
    %c1_i32_17 = arith.constant 1 : i32
    %60 = tpu.dynamic_rotate %0 by %c1_i32_17 dim 1 : vector<4x512xf32>, i32 -> vector<4x512xf32>
    %c511_i32_18 = arith.constant 511 : i32
    %61 = tpu.dynamic_rotate %0 by %c511_i32_18 dim 1 : vector<4x512xf32>, i32 -> vector<4x512xf32>
    %62 = vector.shape_cast %39 : vector<1x512xi1> to vector<1x512xi1>
    %63 = vector.broadcast %62 : vector<1x512xi1> to vector<4x512xi1>
    %64 = arith.select %63, %61, %60 : vector<4x512xi1>, vector<4x512xf32>
    %65 = vector.shape_cast %41 : vector<1x512xi1> to vector<1x512xi1>
    %66 = vector.broadcast %65 : vector<1x512xi1> to vector<4x512xi1>
    %67 = arith.select %66, %60, %61 : vector<4x512xi1>, vector<4x512xf32>
    %c1_i32_19 = arith.constant 1 : i32
    %68 = tpu.dynamic_rotate %51 by %c1_i32_19 dim 1 : vector<4x512xf32>, i32 -> vector<4x512xf32>
    %c511_i32_20 = arith.constant 511 : i32
    %69 = tpu.dynamic_rotate %51 by %c511_i32_20 dim 1 : vector<4x512xf32>, i32 -> vector<4x512xf32>
    %70 = vector.shape_cast %39 : vector<1x512xi1> to vector<1x512xi1>
    %71 = vector.broadcast %70 : vector<1x512xi1> to vector<4x512xi1>
    %72 = arith.select %71, %69, %68 : vector<4x512xi1>, vector<4x512xf32>
    %73 = vector.shape_cast %41 : vector<1x512xi1> to vector<1x512xi1>
    %74 = vector.broadcast %73 : vector<1x512xi1> to vector<4x512xi1>
    %75 = arith.select %74, %68, %69 : vector<4x512xi1>, vector<4x512xf32>
    %76 = tpu.concatenate %56, %48, %59, %64, %0, %67, %72, %51, %75 in 0 : vector<4x512xf32>, vector<4x512xf32>, vector<4x512xf32>, vector<4x512xf32>, vector<4x512xf32>, vector<4x512xf32>, vector<4x512xf32>, vector<4x512xf32>, vector<4x512xf32> -> vector<36x512xf32>
    %cst = arith.constant dense<0.000000e+00> : vector<4x512xf32>
    %77 = tpu.matmul %42, %76, %cst {dimension_numbers = #tpu.dot_dimension_numbers<[1], [0], [0], [1], [0, 0, 1, 1], [], []>} : vector<4x36xf32>, vector<36x512xf32>, vector<4x512xf32> -> vector<4x512xf32>
    %78 = vector.broadcast %43 : vector<4x1xf32> to vector<4x512xf32>
    %79 = arith.addf %77, %78 : vector<4x512xf32>
    %80 = vector.shape_cast %79 : vector<4x512xf32> to vector<4x2x256xf32>
    %cst_21 = arith.constant dense<0.000000e+00> : vector<4x2xf32>
    %81 = vector.multi_reduction <add>, %80, %cst_21 [2] : vector<4x2x256xf32> to vector<4x2xf32>
    %82 = vector.shape_cast %81 : vector<4x2xf32> to vector<4x2x1xf32>
    %cst_22 = arith.constant 3.906250e-03 : f32
    %83 = vector.broadcast %cst_22 : f32 to vector<4x2x1xf32>
    %84 = arith.mulf %82, %83 : vector<4x2x1xf32>
    %85 = arith.mulf %80, %80 : vector<4x2x256xf32>
    %cst_23 = arith.constant dense<0.000000e+00> : vector<4x2xf32>
    %86 = vector.multi_reduction <add>, %85, %cst_23 [2] : vector<4x2x256xf32> to vector<4x2xf32>
    %87 = vector.shape_cast %86 : vector<4x2xf32> to vector<4x2x1xf32>
    %cst_24 = arith.constant 3.906250e-03 : f32
    %88 = vector.broadcast %cst_24 : f32 to vector<4x2x1xf32>
    %89 = arith.mulf %87, %88 : vector<4x2x1xf32>
    %90 = arith.mulf %84, %84 : vector<4x2x1xf32>
    %91 = arith.subf %89, %90 : vector<4x2x1xf32>
    %92 = vector.broadcast %84 : vector<4x2x1xf32> to vector<4x2x256xf32>
    %93 = arith.subf %80, %92 : vector<4x2x256xf32>
    %cst_25 = arith.constant 9.99999974E-6 : f32
    %94 = vector.broadcast %cst_25 : f32 to vector<4x2x1xf32>
    %95 = arith.addf %91, %94 : vector<4x2x1xf32>
    %96 = math.rsqrt %95 : vector<4x2x1xf32>
    %97 = vector.broadcast %96 : vector<4x2x1xf32> to vector<4x2x256xf32>
    %98 = arith.mulf %93, %97 : vector<4x2x256xf32>
    %99 = vector.shape_cast %98 : vector<4x2x256xf32> to vector<4x512xf32>
    %cst_26 = arith.constant 0.00999999977 : f32
    %100 = vector.broadcast %cst_26 : f32 to vector<4x512xf32>
    %101 = arith.mulf %100, %99 : vector<4x512xf32>
    %102 = arith.maximumf %99, %101 : vector<4x512xf32>
    %c0_27 = arith.constant 0 : index
    %c0_28 = arith.constant 0 : index
    %103 = vector.load %arg4[%c0_27, %c0_28] : memref<4x36xf32, #tpu.memory_space<vmem>>, vector<4x36xf32>
    %c0_29 = arith.constant 0 : index
    %c0_30 = arith.constant 0 : index
    %104 = vector.load %arg5[%c0_29, %c0_30] : memref<4x1xf32, #tpu.memory_space<vmem>>, vector<4x1xf32>
    %c16_i32_31 = arith.constant 16 : i32
    %105 = tpu.dynamic_rotate %102 by %c16_i32_31 dim 1 : vector<4x512xf32>, i32 -> vector<4x512xf32>
    %c496_i32_32 = arith.constant 496 : i32
    %106 = tpu.dynamic_rotate %102 by %c496_i32_32 dim 1 : vector<4x512xf32>, i32 -> vector<4x512xf32>
    %107 = vector.shape_cast %35 : vector<1x512xi1> to vector<1x512xi1>
    %108 = vector.broadcast %107 : vector<1x512xi1> to vector<4x512xi1>
    %109 = arith.select %108, %106, %105 : vector<4x512xi1>, vector<4x512xf32>
    %110 = vector.shape_cast %37 : vector<1x512xi1> to vector<1x512xi1>
    %111 = vector.broadcast %110 : vector<1x512xi1> to vector<4x512xi1>
    %112 = arith.select %111, %105, %106 : vector<4x512xi1>, vector<4x512xf32>
    %c1_i32_33 = arith.constant 1 : i32
    %113 = tpu.dynamic_rotate %109 by %c1_i32_33 dim 1 : vector<4x512xf32>, i32 -> vector<4x512xf32>
    %c511_i32_34 = arith.constant 511 : i32
    %114 = tpu.dynamic_rotate %109 by %c511_i32_34 dim 1 : vector<4x512xf32>, i32 -> vector<4x512xf32>
    %115 = vector.shape_cast %39 : vector<1x512xi1> to vector<1x512xi1>
    %116 = vector.broadcast %115 : vector<1x512xi1> to vector<4x512xi1>
    %117 = arith.select %116, %114, %113 : vector<4x512xi1>, vector<4x512xf32>
    %118 = vector.shape_cast %41 : vector<1x512xi1> to vector<1x512xi1>
    %119 = vector.broadcast %118 : vector<1x512xi1> to vector<4x512xi1>
    %120 = arith.select %119, %113, %114 : vector<4x512xi1>, vector<4x512xf32>
    %c1_i32_35 = arith.constant 1 : i32
    %121 = tpu.dynamic_rotate %102 by %c1_i32_35 dim 1 : vector<4x512xf32>, i32 -> vector<4x512xf32>
    %c511_i32_36 = arith.constant 511 : i32
    %122 = tpu.dynamic_rotate %102 by %c511_i32_36 dim 1 : vector<4x512xf32>, i32 -> vector<4x512xf32>
    %123 = vector.shape_cast %39 : vector<1x512xi1> to vector<1x512xi1>
    %124 = vector.broadcast %123 : vector<1x512xi1> to vector<4x512xi1>
    %125 = arith.select %124, %122, %121 : vector<4x512xi1>, vector<4x512xf32>
    %126 = vector.shape_cast %41 : vector<1x512xi1> to vector<1x512xi1>
    %127 = vector.broadcast %126 : vector<1x512xi1> to vector<4x512xi1>
    %128 = arith.select %127, %121, %122 : vector<4x512xi1>, vector<4x512xf32>
    %c1_i32_37 = arith.constant 1 : i32
    %129 = tpu.dynamic_rotate %112 by %c1_i32_37 dim 1 : vector<4x512xf32>, i32 -> vector<4x512xf32>
    %c511_i32_38 = arith.constant 511 : i32
    %130 = tpu.dynamic_rotate %112 by %c511_i32_38 dim 1 : vector<4x512xf32>, i32 -> vector<4x512xf32>
    %131 = vector.shape_cast %39 : vector<1x512xi1> to vector<1x512xi1>
    %132 = vector.broadcast %131 : vector<1x512xi1> to vector<4x512xi1>
    %133 = arith.select %132, %130, %129 : vector<4x512xi1>, vector<4x512xf32>
    %134 = vector.shape_cast %41 : vector<1x512xi1> to vector<1x512xi1>
    %135 = vector.broadcast %134 : vector<1x512xi1> to vector<4x512xi1>
    %136 = arith.select %135, %129, %130 : vector<4x512xi1>, vector<4x512xf32>
    %137 = tpu.concatenate %117, %109, %120, %125, %102, %128, %133, %112, %136 in 0 : vector<4x512xf32>, vector<4x512xf32>, vector<4x512xf32>, vector<4x512xf32>, vector<4x512xf32>, vector<4x512xf32>, vector<4x512xf32>, vector<4x512xf32>, vector<4x512xf32> -> vector<36x512xf32>
    %cst_39 = arith.constant dense<0.000000e+00> : vector<4x512xf32>
    %138 = tpu.matmul %103, %137, %cst_39 {dimension_numbers = #tpu.dot_dimension_numbers<[1], [0], [0], [1], [0, 0, 1, 1], [], []>} : vector<4x36xf32>, vector<36x512xf32>, vector<4x512xf32> -> vector<4x512xf32>
    %139 = vector.broadcast %104 : vector<4x1xf32> to vector<4x512xf32>
    %140 = arith.addf %138, %139 : vector<4x512xf32>
    %141 = vector.shape_cast %140 : vector<4x512xf32> to vector<4x2x256xf32>
    %cst_40 = arith.constant dense<0.000000e+00> : vector<4x2xf32>
    %142 = vector.multi_reduction <add>, %141, %cst_40 [2] : vector<4x2x256xf32> to vector<4x2xf32>
    %143 = vector.shape_cast %142 : vector<4x2xf32> to vector<4x2x1xf32>
    %cst_41 = arith.constant 3.906250e-03 : f32
    %144 = vector.broadcast %cst_41 : f32 to vector<4x2x1xf32>
    %145 = arith.mulf %143, %144 : vector<4x2x1xf32>
    %146 = arith.mulf %141, %141 : vector<4x2x256xf32>
    %cst_42 = arith.constant dense<0.000000e+00> : vector<4x2xf32>
    %147 = vector.multi_reduction <add>, %146, %cst_42 [2] : vector<4x2x256xf32> to vector<4x2xf32>
    %148 = vector.shape_cast %147 : vector<4x2xf32> to vector<4x2x1xf32>
    %cst_43 = arith.constant 3.906250e-03 : f32
    %149 = vector.broadcast %cst_43 : f32 to vector<4x2x1xf32>
    %150 = arith.mulf %148, %149 : vector<4x2x1xf32>
    %151 = arith.mulf %145, %145 : vector<4x2x1xf32>
    %152 = arith.subf %150, %151 : vector<4x2x1xf32>
    %153 = vector.broadcast %145 : vector<4x2x1xf32> to vector<4x2x256xf32>
    %154 = arith.subf %141, %153 : vector<4x2x256xf32>
    %cst_44 = arith.constant 9.99999974E-6 : f32
    %155 = vector.broadcast %cst_44 : f32 to vector<4x2x1xf32>
    %156 = arith.addf %152, %155 : vector<4x2x1xf32>
    %157 = math.rsqrt %156 : vector<4x2x1xf32>
    %158 = vector.broadcast %157 : vector<4x2x1xf32> to vector<4x2x256xf32>
    %159 = arith.mulf %154, %158 : vector<4x2x256xf32>
    %160 = vector.shape_cast %159 : vector<4x2x256xf32> to vector<4x512xf32>
    %161 = arith.addf %0, %160 : vector<4x512xf32>
    %c0_45 = arith.constant 0 : index
    %c0_46 = arith.constant 0 : index
    %162 = vector.load %arg6[%c0_45, %c0_46] : memref<4x512xf32, #tpu.memory_space<vmem>>, vector<4x512xf32>
    tpu.vector_store %arg6[%c0_45, %c0_46], %161 {strides = array<i32>} : memref<4x512xf32, #tpu.memory_space<vmem>>, vector<4x512xf32>,
    return
  }
  func.func @transform_0(%arg0: i32) -> (i32, i32) {
    %c0_i32 = arith.constant 0 : i32
    %c0_i32_0 = arith.constant 0 : i32
    return %c0_i32, %arg0 : i32, i32
  }
  func.func @transform_1(%arg0: i32) -> (i32, i32) {
    %c0_i32 = arith.constant 0 : i32
    %c0_i32_0 = arith.constant 0 : i32
    %c0_i32_1 = arith.constant 0 : i32
    return %c0_i32, %c0_i32_0 : i32, i32
  }
  func.func @transform_2(%arg0: i32) -> (i32, i32) {
    %c0_i32 = arith.constant 0 : i32
    %c0_i32_0 = arith.constant 0 : i32
    %c0_i32_1 = arith.constant 0 : i32
    return %c0_i32, %c0_i32_0 : i32, i32
  }
  func.func @transform_3(%arg0: i32) -> (i32, i32) {
    %c0_i32 = arith.constant 0 : i32
    %c0_i32_0 = arith.constant 0 : i32
    %c0_i32_1 = arith.constant 0 : i32
    return %c0_i32, %c0_i32_0 : i32, i32
  }
  func.func @transform_4(%arg0: i32) -> (i32, i32) {
    %c0_i32 = arith.constant 0 : i32
    %c0_i32_0 = arith.constant 0 : i32
    %c0_i32_1 = arith.constant 0 : i32
    return %c0_i32, %c0_i32_0 : i32, i32
  }
  func.func @transform_5(%arg0: i32) -> (i32, i32) {
    %c0_i32 = arith.constant 0 : i32
    %c0_i32_0 = arith.constant 0 : i32
    return %c0_i32, %arg0 : i32, i32
  }
}

</mosaic_0001>

<bundles_post_ra>
// kernel: tpu_custom_call.1
= control target key start
LH: loop header
LB: loop body
LE: loop exit
PB: predicated region body
PF: predicated region fallthrough
CT: control target
= control target key end

     0   :  { %10 = vsyncpa [#allocation3], 0  ;;  %s2398_s0 = inlined_call_operand.hbm [shape: f32[4,512], index: 0, kind: input, shape index: {}]   ;;  %s2399_s1 = inlined_call_operand.vmem [shape: f32[4,36], index: 1, kind: input, shape index: {}]   ;;  %s2400_s2 = inlined_call_operand.vmem [shape: f32[4,1], index: 2, kind: input, shape index: {}]   ;;  %s2401_s3 = inlined_call_operand.vmem [shape: f32[4,36], index: 3, kind: input, shape index: {}]   ;;  %s2402_s4 = inlined_call_operand.vmem [shape: f32[4,1], index: 4, kind: input, shape index: {}]   ;;  %s2403_s5 = inlined_call_operand.hbm [shape: f32[4,512], index: 5, kind: output, shape index: {}]  }
   0x1   :  { %11 = vsyncpa [#allocation4], 0  ;;  %s1552_s18 = smov [#allocation2]   ;;  %s1504_s22 = scalar_lea.hbm %s2398_s0, 256 }
   0x2   :  { %s18_s19 = sshll.u32 %s1552_s18, 4  ;;  %p1505_p0 = scmp.ne.s32.totalorder %s2398_s0, %s1504_s22  ;;  %s19_s19 = int_to_ptr.vmem [resolvable:$true] %s18_s19 }
   0x3   :  { %p1508_p1 = scmp.lt.u32.totalorder %s1504_s22, %s2398_s0 }
   0x5   :  { %p1510_p2 = pnand %p1508_p1, %p1505_p0 }
   0x7   :  { %1513 = shalt.err (!%p1510_p2)
}
   0x8   :  { %s1514_s27 = scalar_lea.vmem %s19_s19, 256  ;;  %p1519_p4 = scmp.lt.s32.totalorder %s19_s19, %s19_s19 }
   0x9   :  { %p1515_p3 = scmp.ne.s32.totalorder %s19_s19, %s1514_s27  ;;  %p1520_p5 = scmp.lt.s32.totalorder %s1514_s27, %s1514_s27 }
   0xb   :  { %p1521_p6 = por %p1520_p5, %p1519_p4 }
   0xd   :  { %p1522_p7 = pnand %p1521_p6, %p1515_p3 }
   0xf   :  { %1525 = shalt.err (!%p1522_p7)
}
  0x10   :  { %21 = dma.hbm_to_vmem [thread:$0]  %s2398_s0, 256, %s19_s19, [#allocation3]  }
  0x11   :  { %1548 = dma.done.wait [#allocation3], 256  }
  0x12   :  { %1549 = vsyncadd [#allocation3], 4294967040  ;;  %v1604_v0 = vld [vmem:[#allocation2 + $0x8] sm:$0xff]  ;;  %v1606_v1 = vld [vmem:[#allocation2] sm:$0xff]  ;;  %s1553_s30 = smov 16   ;;  %s1554_s0 = smov 112   ;;  %v35_v6 = vlaneseq }
  0x13   :  { %164 = vrot.lane.b32.xlu1 %v1604_v0, %s1553_s30  ;;  %160 = vrot.lane.b32.xlu0 %v1606_v1, %s1553_s30  ;;  %v1614_v2 = vcombine.high %v1604_v0, %v1604_v0  ;;  %v1622_v3 = vcombine.high %v1606_v1, %v1606_v1  ;;  %s1555_s6 = smov 1   ;;  %s1556_s7 = smov 127   ;;  %v1557_v41 = vmov 0.0   ;;  %v153_v42 = vld [vmem:[%s2400_s2] sm:$0xf]  ;;  %v1558_v43 = vmov 0  }
  0x14   :  { %v1641_v9 = vand.u32 127, %v35_v6  ;;  %474 = vmatprep.mubr.f32.mxu0 %v1557_v41  ;;  %545 = vmatprep.mubr.f32.mxu1 %v1557_v41 }
  0x15   :  { %v1403_v4 = vpack.i.bf16 %v1622_v3, %v1606_v1  ;;  %v1408_v5 = vpack.i.bf16 %v1614_v2, %v1604_v0  ;;  %1443 = vset.pattern.permute.xlu0 %v1558_v43 }
  0x16   :  { %v1644_v10 = vadd.s32 256, %v1641_v9  ;;  %vm181_vm0 = vcmp.lt.s32.totalorder %v1641_v9, 112  ;;  %v44_v17 = vand.u32 255, %v1641_v9  ;;  %vm2404_vm1 = vcmp.lt.s32.totalorder %v1641_v9, 16 }
  0x17   :  { %166 = vrot.lane.b32.xlu1 %v1614_v2, %s1553_s30  ;;  %173 = vrot.lane.b32.xlu0 %v1606_v1, %s1554_s0  ;;  %v37_v23 = vadd.s32 128, %v1641_v9  ;;  %v39_v32 = vadd.s32 384, %v1641_v9  ;;  %v92_v54 = vand.u32 15, %v1641_v9  ;;  %vm2409_vm6 = vcmp.lt.s32.totalorder %v1641_v9, 1 }
  0x18   :  { %v58_v13 = vand.u32 255, %v1644_v10  ;;  %vm1671_vm3 = vcmp.lt.s32.totalorder %v44_v17, 16  ;;  %v106_v49 = vand.u32 15, %v1644_v10  ;;  %vm2405_vm7 = vcmp.lt.s32.totalorder %v1641_v9, 127 }
  0x19   :  { %v51_v31 = vand.u32 255, %v37_v23  ;;  %v65_v36 = vand.u32 255, %v39_v32  ;;  %v99_v50 = vand.u32 15, %v37_v23  ;;  %v113_v51 = vand.u32 15, %v39_v32 }
  0x1a   :  { %vm1656_vm2 = vcmp.lt.s32.totalorder %v58_v13, 16  ;;  %vm1749_vm8 = vcmp.eq.s32.totalorder %v106_v49, 15  ;;  %vm1769_vm13 = vcmp.eq.s32.totalorder %v92_v54, 15  ;;  %vm1773_vm14 = vcmp.eq.s32.totalorder %v92_v54, 0 }
  0x1b   :  { %175 = vrot.lane.b32.xlu1 %v1622_v3, %s1554_s0  ;;  %162 = vrot.lane.b32.xlu0 %v1622_v3, %s1553_s30  ;;  %vm1704_vm4 = vcmp.ge.s32.totalorder %v51_v31, 240  ;;  %vm1718_vm5 = vcmp.ge.s32.totalorder %v65_v36, 240  ;;  %vm1753_vm9 = vcmp.eq.s32.totalorder %v99_v50, 0  ;;  %vm1757_vm10 = vcmp.eq.s32.totalorder %v99_v50, 15 }
  0x1c   :  { %vm1761_vm11 = vcmp.eq.s32.totalorder %v113_v51, 0  ;;  %vm1765_vm12 = vcmp.eq.s32.totalorder %v113_v51, 15  ;;  %vm1777_vm15 = vcmp.eq.s32.totalorder %v106_v49, 0 }
  0x1f   :  { %179 = vrot.lane.b32.xlu1 %v1614_v2, %s1554_s0  ;;  %177 = vrot.lane.b32.xlu0 %v1604_v0, %s1554_s0 }
  0x23   :  { %1404 = vrot.lane.b32.xlu0 %v1403_v4, %s1555_s6  ;;  %1409 = vrot.lane.b32.xlu1 %v1408_v5, %s1555_s6 }
  0x27   :  { %1414 = vrot.lane.b32.xlu0 %v1403_v4, %s1556_s7  ;;  %1419 = vrot.lane.b32.xlu1 %v1408_v5, %s1556_s7 }
  0x85   :  { %v165_v7 = vpop.permute.xlu1 %164  ;;  %v161_v8 = vpop.permute.xlu0 %160 }
  0x89   :  { %v167_v11 = vpop.permute.xlu1 %166  ;;  %v174_v12 = vpop.permute.xlu0 %173 }
  0x8a   :  { %v1669_v24 = vsel %vm2404_vm1, %v165_v7, %v167_v11  ;;  %v172_v28 = vsel %vm2404_vm1, %v167_v11, %v161_v8 }
  0x8d   :  { %v176_v14 = vpop.permute.xlu1 %175  ;;  %v163_v15 = vpop.permute.xlu0 %162 }
  0x8e   :  { %v1650_v16 = vsel %vm181_vm0, %v174_v12, %v176_v14  ;;  %v170_v21 = vsel %vm2404_vm1, %v163_v15, %v165_v7  ;;  %v1693_v30 = vsel %vm2404_vm1, %v161_v8, %v163_v15  ;;  %vm2408_vm1 = vcmask 1043456  }
  0x8f   :  { %292 = vrot.lane.b32.xlu0 %v1650_v16, %s1555_s6  ;;  %v1689_v29 = vsel %vm1671_vm3, %v1650_v16, %v172_v28  ;;  %v329_v32 = vrot.slane %v1693_v30, 4 }
  0x90   :  { %v1423_v33 = vpack.i.bf16 %v1693_v30, %v1689_v29 }
  0x91   :  { %v180_v19 = vpop.permute.xlu1 %179  ;;  %v178_v20 = vpop.permute.xlu0 %177 }
  0x92   :  { %v1664_v22 = vsel %vm181_vm0, %v178_v20, %v180_v19  ;;  %v183_v34 = vsel %vm181_vm0, %v176_v14, %v178_v20  ;;  %v185_v38 = vsel %vm181_vm0, %v180_v19, %v174_v12  ;;  %v364_v20 = vrot.slane %v1650_v16, 4 }
  0x93   :  { %v1678_v26 = vsel %vm1656_vm2, %v1664_v22, %v170_v21  ;;  %296 = vrot.lane.b32.xlu0 %v1664_v22, %s1555_s6  ;;  %v1712_v37 = vsel %vm1704_vm4, %v1693_v30, %v183_v34  ;;  %v1726_v40 = vsel %vm1718_vm5, %v1669_v24, %v185_v38 }
  0x94   :  { %v1428_v27 = vpack.i.bf16 %v1669_v24, %v1678_v26  ;;  %v365_v34 = vrot.slane %v1712_v37, 4 }
  0x95   :  { %v1405_v44 = vpop.permute.xlu0 %1404  ;;  %v1410_v46 = vpop.permute.xlu1 %1409 }
  0x96   :  { %1429 = vrot.lane.b32.xlu1 %v1428_v27, %s1555_s6  ;;  %v1407_v52 = vunpack.i.h.bf16 %v1405_v44  ;;  %v1406_v53 = vunpack.i.l.bf16 %v1405_v44  ;;  %v1412_v55 = vunpack.i.h.bf16 %v1410_v46  ;;  %v1411_v60 = vunpack.i.l.bf16 %v1410_v46 }
  0x97   :  { %304 = vrot.lane.b32.xlu0 %v1650_v16, %s1556_s7 }
  0x98   :  { %v270_v13 = vsel %vm2409_vm6, %v1406_v53, %v1407_v52  ;;  %v271_v14 = vsel %vm2409_vm6, %v1412_v55, %v1406_v53  ;;  %v269_v21 = vsel %vm2409_vm6, %v1407_v52, %v1411_v60  ;;  %v1799_v28 = vsel %vm2409_vm6, %v1411_v60, %v1412_v55 }
  0x99   :  { %v1415_v45 = vpop.permute.xlu0 %1414  ;;  %v1420_v48 = vpop.permute.xlu1 %1419 }
  0x9a   :  { %1439 = vrot.lane.b32.xlu1 %v1428_v27, %s1556_s7  ;;  %v1417_v56 = vunpack.i.h.bf16 %v1415_v45  ;;  %v1416_v57 = vunpack.i.l.bf16 %v1415_v45  ;;  %v1421_v58 = vunpack.i.l.bf16 %v1420_v48  ;;  %v1422_v61 = vunpack.i.h.bf16 %v1420_v48 }
  0x9b   :  { %1424 = vrot.lane.b32.xlu0 %v1423_v33, %s1555_s6  ;;  %v331_v27 = vrot.slane %v1669_v24, 4 }
  0x9c   :  { %v282_v15 = vsel %vm2405_vm7, %v1416_v57, %v1417_v56  ;;  %v281_v17 = vsel %vm2405_vm7, %v1417_v56, %v1421_v58  ;;  %v280_v23 = vsel %vm2405_vm7, %v1421_v58, %v1422_v61  ;;  %v1803_v31 = vsel %vm2405_vm7, %v1422_v61, %v1416_v57 }
  0x9d   :  { %v288_v36 = vsel %vm1769_vm13, %v271_v14, %v282_v15  ;;  %v289_v24 = vsel %vm1757_vm10, %v270_v13, %v281_v17  ;;  %v290_v43 = vsel %vm1749_vm8, %v269_v21, %v280_v23  ;;  %v287_v49 = vsel %vm1761_vm11, %v1803_v31, %v1799_v28 }
  0x9e   :  { %294 = vrot.lane.b32.xlu1 %v1712_v37, %s1555_s6  ;;  %v284_v50 = vsel %vm1773_vm14, %v282_v15, %v271_v14  ;;  %v352_v54 = vrot.slane %v288_v36, 4  ;;  %v353_v55 = vrot.slane %v289_v24, 4  ;;  %v286_v58 = vsel %vm1777_vm15, %v280_v23, %v269_v21 }
  0x9f   :  { %1434 = vrot.lane.b32.xlu0 %v1423_v33, %s1556_s7  ;;  %v328_v33 = vrot.slane %v1689_v29, 4  ;;  %v285_v29 = vsel %vm1753_vm9, %v281_v17, %v270_v13  ;;  %v1833_v60 = vrot.slane %v290_v43, 4  ;;  %v343_v14 = vrot.slane %v287_v49, 4 }
  0xa0   :  { %v341_v13 = vrot.slane %v285_v29, 4  ;;  %v340_v15 = vrot.slane %v284_v50, 4  ;;  %v342_v24 = vrot.slane %v286_v58, 4 }
  0xa2   :  { %298 = vrot.lane.b32.xlu1 %v1726_v40, %s1555_s6 }
  0xa3   :  { %308 = vrot.lane.b32.xlu0 %v1664_v22, %s1556_s7 }
  0xa6   :  { %306 = vrot.lane.b32.xlu1 %v1712_v37, %s1556_s7 }
  0xa7   :  { %391 = vperm.xlu0 %1443, %v153_v42   ;;  %v330_v42 = vrot.slane %v1678_v26, 4  ;;  %v291_v26 = vsel %vm1765_vm12, %v1799_v28, %v1803_v31 }
  0xaa   :  { %310 = vrot.lane.b32.xlu1 %v1726_v40, %s1556_s7 }
 0x101   :  { %v1741_v47 = vpop.permute.xlu0 %292 }
 0x105   :  { %v1745_v59 = vpop.permute.xlu0 %296 }
 0x108   :  { %v1430_v10 = vpop.permute.xlu1 %1429 }
 0x109   :  { %v1789_v19 = vpop.permute.xlu0 %304  ;;  %v1431_v46 = vunpack.i.l.bf16 %v1430_v10  ;;  %v1432_v51 = vunpack.i.h.bf16 %v1430_v10 }
 0x10b   :  { %v219_v23 = vsel %vm2409_vm6, %v1431_v46, %v1432_v51 }
 0x10c   :  { %v1440_v38 = vpop.permute.xlu1 %1439 }
 0x10d   :  { %v1442_v44 = vunpack.i.h.bf16 %v1440_v38  ;;  %v1441_v45 = vunpack.i.l.bf16 %v1440_v38  ;;  %v1425_v30 = vpop.permute.xlu0 %1424 }
 0x10e   :  { %v1427_v48 = vunpack.i.h.bf16 %v1425_v30  ;;  %v1426_v53 = vunpack.i.l.bf16 %v1425_v30 }
 0x10f   :  { %v232_v52 = vsel %vm2405_vm7, %v1441_v45, %v1442_v44 }
 0x110   :  { %v220_v56 = vsel %vm2409_vm6, %v1427_v48, %v1431_v46  ;;  %v295_v57 = vpop.permute.xlu1 %294  ;;  %v222_v36 = vsel %vm2409_vm6, %v1432_v51, %v1426_v53  ;;  %v221_v21 = vsel %vm2409_vm6, %v1426_v53, %v1427_v48 }
 0x111   :  { %v1435_v61 = vpop.permute.xlu0 %1434  ;;  %v246_v28 = vsel %vm1777_vm15, %v232_v52, %v220_v56  ;;  %v258_v31 = vsel %vm1749_vm8, %v220_v56, %v232_v52  ;;  %v302_v38 = vsel %vm2409_vm6, %v1741_v47, %v295_v57 }
 0x112   :  { %v1437_v10 = vunpack.i.h.bf16 %v1435_v61  ;;  %v1436_v17 = vunpack.i.l.bf16 %v1435_v61  ;;  %v375_v50 = vsel %vm2408_vm1, %v246_v28, %v330_v42  ;;  %v379_v51 = vsel %vm2408_vm1, %v258_v31, %v342_v24 }
 0x113   :  { %v1371_v31 = vpack.c.bf16 %v379_v51, %v375_v50  ;;  %v355_v24 = vrot.slane %v291_v26, 4 }
 0x114   :  { %v234_v43 = vsel %vm2405_vm7, %v1436_v17, %v1437_v10  ;;  %v299_v30 = vpop.permute.xlu1 %298  ;;  %v233_v29 = vsel %vm2405_vm7, %v1437_v10, %v1441_v45  ;;  %v235_v49 = vsel %vm2405_vm7, %v1442_v44, %v1436_v17 }
 0x115   :  { %v245_v48 = vsel %vm1753_vm9, %v233_v29, %v221_v21  ;;  %v257_v46 = vsel %vm1757_vm10, %v221_v21, %v233_v29  ;;  %v247_v45 = vsel %vm1761_vm11, %v235_v49, %v219_v23  ;;  %v259_v44 = vsel %vm1765_vm12, %v219_v23, %v235_v49  ;;  %v309_v10 = vpop.permute.xlu0 %308 }
 0x116   :  { %v374_v52 = vsel %vm2408_vm1, %v245_v48, %v329_v32  ;;  %v378_v53 = vsel %vm2408_vm1, %v257_v46, %v341_v13  ;;  %v376_v58 = vsel %vm2408_vm1, %v247_v45, %v331_v27  ;;  %v380_v61 = vsel %vm2408_vm1, %v259_v44, %v343_v14 }
 0x117   :  { %v1361_v56 = vpack.c.bf16 %v378_v53, %v374_v52  ;;  %v244_v42 = vsel %vm1773_vm14, %v234_v43, %v222_v36  ;;  %v1369_v28 = vpack.c.bf16 %v380_v61, %v376_v58  ;;  %v256_v32 = vsel %vm1769_vm13, %v222_v36, %v234_v43 }
 0x118   :  { %v307_v17 = vpop.permute.xlu1 %306  ;;  %v373_v13 = vsel %vm2408_vm1, %v244_v42, %v328_v33  ;;  %v303_v21 = vsel %vm2409_vm6, %v299_v30, %v1741_v47  ;;  %v377_v23 = vsel %vm2408_vm1, %v256_v32, %v340_v15  ;;  %v382_v47 = vsel %vm2408_vm1, %v1622_v3, %v353_v55 }
 0x119   :  { %v313_v27 = vsel %vm2405_vm7, %v307_v17, %v309_v10  ;;  %v314_v14 = vsel %vm2405_vm7, %v1789_v19, %v307_v17  ;;  %1362 = vmatprep.subr.bf16.mxu0 %v1361_v56  ;;  %1370 = vmatprep.subr.bf16.mxu1 %v1369_v28  ;;  %v1363_v43 = vpack.c.bf16 %v377_v23, %v373_v13  ;;  %v366_v49 = vrot.slane %v1664_v22, 4 }
 0x11a   :  { %v316_v36 = vsel %vm1773_vm14, %v314_v14, %v303_v21  ;;  %v317_v33 = vsel %vm1753_vm9, %v313_v27, %v302_v38  ;;  %1372 = vmatpush1.bf16.msra.mxu1 %v1371_v31  ;;  %v381_v15 = vsel %vm2408_vm1, %v1606_v1, %v352_v54  ;;  %v367_v48 = vrot.slane %v1726_v40, 4 }
 0x11b   :  { %v386_v29 = vsel %vm2408_vm1, %v317_v33, %v365_v34  ;;  %v385_v26 = vsel %vm2408_vm1, %v316_v36, %v364_v20  ;;  %1364 = vmatpush1.bf16.msra.mxu0 %v1363_v43  ;;  %v301_v3 = vsel %vm2409_vm6, %v295_v57, %v1745_v59  ;;  %v300_v1 = vsel %vm2409_vm6, %v1745_v59, %v299_v30 }
 0x11c   :  { %v311_v46 = vpop.permute.xlu1 %310  ;;  %v1365_v50 = vpack.c.bf16 %v386_v29, %v382_v47  ;;  %v1367_v51 = vpack.c.bf16 %v385_v26, %v381_v15  ;;  %v384_v20 = vsel %vm2408_vm1, %v1614_v2, %v355_v24  ;;  %v383_v59 = vsel %vm2408_vm1, %v1604_v0, %v1833_v60  ;;  %v152_v2 = vld [vmem:[%s2399_s1] sm:$0xf] }
 0x11d   :  { %v312_v16 = vsel %vm2405_vm7, %v309_v10, %v311_v46  ;;  %v315_v22 = vsel %vm2405_vm7, %v311_v46, %v1789_v19  ;;  %v321_v19 = vsel %vm1757_vm10, %v302_v38, %v313_v27  ;;  %vm2406_vm7 = vcmask 293888  }
 0x11e   :  { %v318_v37 = vsel %vm1777_vm15, %v312_v16, %v301_v3  ;;  %v319_v40 = vsel %vm1761_vm11, %v315_v22, %v300_v1  ;;  %1366 = vmatprep.subr.bf16.mxu0 %v1365_v50  ;;  %v320_v30 = vsel %vm1769_vm13, %v303_v21, %v314_v14  ;;  %v323_v0 = vsel %vm1765_vm12, %v300_v1, %v315_v22 }
 0x11f   :  { %v388_v34 = vsel %vm2408_vm1, %v319_v40, %v367_v48  ;;  %v387_v54 = vsel %vm2408_vm1, %v318_v37, %v366_v49  ;;  %1368 = vmatpush1.bf16.msra.mxu0 %v1367_v51  ;;  %v322_v60 = vsel %vm1749_vm8, %v301_v3, %v312_v16  ;;  %v1559_v38 = vmov 1983009808  }
 0x120   :  { %v1373_v55 = vpack.c.bf16 %v388_v34, %v384_v20  ;;  %v1375_v57 = vpack.c.bf16 %v387_v54, %v383_v59  ;;  %1348 = vmatprep.subr.msk.mxu0 %vm2408_vm1, %v321_v19  ;;  %v553_v52 = vunpack.c.l.s4 %v1559_v38  ;;  %v556_v45 = vshrl.u32 %v35_v6, 7 }
 0x121   :  { %v1560_v44 = vmov 1934713408  }
 0x122   :  { %1374 = vmatprep.subr.bf16.mxu1 %v1373_v55  ;;  %v554_v53 = vunpack.c.0.s8 %v553_v52  ;;  %v569_v56 = vunpack.c.l.s4 %v1560_v44 }
 0x123   :  { %1376 = vmatpush1.bf16.msra.mxu1 %v1375_v57  ;;  %1349 = vmatpush1.msk.msra.mxu0 %vm2408_vm1, %v320_v30 }
 0x124   :  { %1351 = vmatprep.subr.msk.mxu1 %vm2408_vm1, %v323_v0  ;;  %1350 = vmatmul.mubr.msk.f32.vlgmr.msra.gmra.mrb[0].mxu0 %vm2406_vm7, %v152_v2  ;;  %v1940_v61 = vsub.s32 %v554_v53, %v556_v45  ;;  %v570_v28 = vunpack.c.0.s8 %v569_v56 }
 0x125   :  { %1041 = vmatprep.mubr.f32.mxu0 %v1557_v41 }
 0x126   :  { %v392_v58 = vpop.permute.xlu0 %391  ;;  %v1944_v24 = vsub.s32 %v570_v28, %v556_v45 }
 0x127   :  { %1352 = vmatpush1.msk.msra.mxu1 %vm2408_vm1, %v322_v60 }
 0x128   :  { %1353 = vmatmul.mubr.msk.f32.vlgmr.msra.gmra.mrb[0].mxu1 %vm2406_vm7, %v152_v2  ;;  %vm2407_vm7 = vcmask 1041408  }
 0x129   :  { %1112 = vmatprep.mubr.f32.mxu1 %v1557_v41 }
 0x1f7   :  { %v476_v42 = vpop.f32.mrb[0].mxu0 }
 0x1f8   :  { %v477_v10 = vadd.f32 %v476_v42, %v392_v58  ;;  %v478_v17 = vpop.f32.mrb[1].mxu0 }
 0x1f9   :  { %v479_v32 = vadd.f32 %v478_v17, %v392_v58 }
 0x1fa   :  { %v558_v21 = vrot.slane %v477_v10, %v1940_v61 }
 0x1fb   :  { %v547_v13 = vpop.f32.mrb[0].mxu1  ;;  %v590_v14 = vrot.slane %v479_v32, %v1940_v61 }
 0x1fc   :  { %v548_v31 = vadd.f32 %v547_v13, %v392_v58  ;;  %v549_v27 = vpop.f32.mrb[1].mxu1 }
 0x1fd   :  { %v550_v23 = vadd.f32 %v549_v27, %v392_v58 }
 0x1fe   :  { %v565_v6 = vrot.slane %v548_v31, %v1940_v61 }
 0x1ff   :  { %v597_v36 = vrot.slane %v550_v23, %v1940_v61 }
 0x200   :  { %v566_v33 = vcombine.low %v558_v21, %v565_v6  ;;  %v567_v43 = vcombine.high %v558_v21, %v565_v6 }
 0x201   :  { %v598_v47 = vcombine.low %v590_v14, %v597_v36  ;;  %v599_v29 = vcombine.high %v590_v14, %v597_v36 }
 0x202   :  { %v1949_v15 = vrot.slane %v566_v33, %v1944_v24  ;;  %v1952_v26 = vrot.slane %v567_v43, %v1944_v24 }
 0x203   :  { %v1955_v49 = vrot.slane %v598_v47, %v1944_v24  ;;  %v1958_v48 = vrot.slane %v599_v29, %v1944_v24 }
 0x204   :  { %v617_v46 = vsel %vm2407_vm7, %v1949_v15, 0.0  ;;  %v1964_v50 = vcombine.high %v1949_v15, %v1557_v41  ;;  %v1974_v1 = vcombine.high %v1952_v26, %v1557_v41  ;;  %v627_v40 = vsel %vm2407_vm7, %v1952_v26, 0.0 }
 0x205   :  { %v618_v51 = vsel %vm2407_vm7, %v1955_v49, 0.0  ;;  %v1970_v3 = vcombine.high %v1955_v49, %v1557_v41  ;;  %v1978_v16 = vcombine.high %v1958_v48, %v1557_v41  ;;  %v628_v34 = vsel %vm2407_vm7, %v1958_v48, 0.0 }
 0x206   :  { %v619_v22 = vadd.f32 %v618_v51, %v617_v46  ;;  %v622_v37 = vsel %vm2407_vm7, %v1964_v50, 0.0  ;;  %v641_v59 = vmul.f32 %v1949_v15, %v1949_v15  ;;  %v642_v54 = vmul.f32 %v1955_v49, %v1955_v49 }
 0x207   :  { %v623_v20 = vsel %vm2407_vm7, %v1970_v3, 0.0  ;;  %v632_v55 = vsel %vm2407_vm7, %v1974_v1, 0.0  ;;  %v633_v57 = vsel %vm2407_vm7, %v1978_v16, 0.0  ;;  %v643_v2 = vmul.f32 %v1964_v50, %v1964_v50 }
 0x208   :  { %620 = vadd.xlane.f32.xlu1 %v619_v22  ;;  %v624_v19 = vadd.f32 %v623_v20, %v622_v37  ;;  %v644_v30 = vmul.f32 %v1970_v3, %v1970_v3  ;;  %v629_v0 = vadd.f32 %v628_v34, %v627_v40  ;;  %v649_v60 = vsel %vm2407_vm7, %v641_v59, 0.0 }
 0x209   :  { %v650_v38 = vsel %vm2407_vm7, %v642_v54, 0.0  ;;  %v645_v52 = vmul.f32 %v1952_v26, %v1952_v26  ;;  %v646_v53 = vmul.f32 %v1958_v48, %v1958_v48  ;;  %v634_v45 = vadd.f32 %v633_v57, %v632_v55 }
 0x20a   :  { %625 = vadd.xlane.f32.xlu0 %v624_v19  ;;  %v654_v44 = vsel %vm2407_vm7, %v643_v2, 0.0  ;;  %v655_v56 = vsel %vm2407_vm7, %v644_v30, 0.0  ;;  %v647_v58 = vmul.f32 %v1974_v1, %v1974_v1  ;;  %v648_v42 = vmul.f32 %v1978_v16, %v1978_v16 }
 0x20b   :  { %v651_v10 = vadd.f32 %v650_v38, %v649_v60  ;;  %v659_v17 = vsel %vm2407_vm7, %v645_v52, 0.0  ;;  %v660_v28 = vsel %vm2407_vm7, %v646_v53, 0.0  ;;  %v656_v32 = vadd.f32 %v655_v56, %v654_v44 }
 0x20c   :  { %630 = vadd.xlane.f32.xlu1 %v629_v0  ;;  %v664_v13 = vsel %vm2407_vm7, %v647_v58, 0.0  ;;  %v665_v31 = vsel %vm2407_vm7, %v648_v42, 0.0  ;;  %v661_v21 = vadd.f32 %v660_v28, %v659_v17  ;;  %vm2434_vm7 = vcmp.lt.s32.totalorder %v1641_v9, 16 }
 0x20d   :  { %v666_v27 = vadd.f32 %v665_v31, %v664_v13  ;;  %vm2435_vm1 = vmmov %vm2434_vm7 }
 0x20e   :  { %635 = vadd.xlane.f32.xlu0 %v634_v45  ;;  %vm2436_vm6 = vmmov %vm2435_vm1 }
 0x210   :  { %652 = vadd.xlane.f32.xlu1 %v651_v10 }
 0x212   :  { %657 = vadd.xlane.f32.xlu0 %v656_v32 }
 0x214   :  { %662 = vadd.xlane.f32.xlu1 %v661_v21 }
 0x216   :  { %667 = vadd.xlane.f32.xlu0 %v666_v27 }
 0x295   :  { %v621_v14 = vpop.xlane.xlu1 %620 }
 0x296   :  { %v637_v36 = vmul.f32 0.00390625, %v621_v14 }
 0x297   :  { %v626_v23 = vpop.xlane.xlu0 %625 }
 0x298   :  { %v638_v43 = vmul.f32 0.00390625, %v626_v23  ;;  %v673_v46 = vmul.f32 %v637_v36, %v637_v36  ;;  %v681_v58 = vsub.f32 %v1949_v15, %v637_v36  ;;  %v682_v42 = vsub.f32 %v1955_v49, %v637_v36 }
 0x299   :  { %v631_v6 = vpop.xlane.xlu1 %630 }
 0x29a   :  { %v639_v29 = vmul.f32 0.00390625, %v631_v6  ;;  %v674_v20 = vmul.f32 %v638_v43, %v638_v43  ;;  %v683_v32 = vsub.f32 %v1964_v50, %v638_v43  ;;  %v684_v13 = vsub.f32 %v1970_v3, %v638_v43 }
 0x29b   :  { %v636_v33 = vpop.xlane.xlu0 %635 }
 0x29c   :  { %v640_v37 = vmul.f32 0.00390625, %v636_v33  ;;  %v675_v55 = vmul.f32 %v639_v29, %v639_v29  ;;  %v685_v10 = vsub.f32 %v1952_v26, %v639_v29  ;;  %v686_v17 = vsub.f32 %v1958_v48, %v639_v29 }
 0x29d   :  { %v653_v47 = vpop.xlane.xlu1 %652 }
 0x29e   :  { %v669_v51 = vmul.f32 0.00390625, %v653_v47  ;;  %v676_v60 = vmul.f32 %v640_v37, %v640_v37  ;;  %v687_v31 = vsub.f32 %v1974_v1, %v640_v37  ;;  %v688_v21 = vsub.f32 %v1978_v16, %v640_v37 }
 0x29f   :  { %v658_v22 = vpop.xlane.xlu0 %657 }
 0x2a0   :  { %v677_v40 = vsub.f32 %v669_v51, %v673_v46  ;;  %v670_v34 = vmul.f32 0.00390625, %v658_v22 }
 0x2a1   :  { %v663_v59 = vpop.xlane.xlu1 %662 }
 0x2a2   :  { %v689_v54 = vadd.f32 1e-05, %v677_v40  ;;  %v678_v19 = vsub.f32 %v670_v34, %v674_v20  ;;  %v671_v57 = vmul.f32 0.00390625, %v663_v59 }
 0x2a3   :  { %v668_v2 = vpop.xlane.xlu0 %667 }
 0x2a4   :  { %v690_v30 = vadd.f32 1e-05, %v678_v19  ;;  %v679_v0 = vsub.f32 %v671_v57, %v675_v55  ;;  %v672_v38 = vmul.f32 0.00390625, %v668_v2  ;;  %1486 = vrsqrt.f32 %v689_v54 }
 0x2a6   :  { %v691_v52 = vadd.f32 1e-05, %v679_v0  ;;  %v680_v53 = vsub.f32 %v672_v38, %v676_v60  ;;  %1488 = vrsqrt.f32 %v690_v30 }
 0x2a8   :  { %1490 = vrsqrt.f32 %v691_v52  ;;  %v692_v45 = vadd.f32 1e-05, %v680_v53 }
 0x2aa   :  { %1492 = vrsqrt.f32 %v692_v45 }
 0x2ae   :  { %v1487_v44 = vpop.eup %1486 }
 0x2af   :  { %v697_v27 = vmul.f32 %v1487_v44, %v681_v58  ;;  %v698_v14 = vmul.f32 %v1487_v44, %v682_v42 }
 0x2b0   :  { %v1489_v56 = vpop.eup %1488 }
 0x2b1   :  { %v699_v33 = vmul.f32 %v1489_v56, %v683_v32  ;;  %v700_v49 = vmul.f32 %v1489_v56, %v684_v13 }
 0x2b2   :  { %v1491_v28 = vpop.eup %1490 }
 0x2b3   :  { %v701_v23 = vmul.f32 %v1491_v28, %v685_v10  ;;  %v702_v6 = vmul.f32 %v1491_v28, %v686_v17 }
 0x2b4   :  { %v1493_v15 = vpop.eup %1492 }
 0x2b5   :  { %v705_v36 = vcombine.low %v697_v27, %v701_v23  ;;  %v730_v26 = vcombine.low %v698_v14, %v702_v6  ;;  %v703_v47 = vmul.f32 %v1493_v15, %v687_v31  ;;  %v704_v48 = vmul.f32 %v1493_v15, %v688_v21  ;;  %v764_v15 = vld [vmem:[%s2402_s4] sm:$0xf] }
 0x2b7   :  { %v713_v29 = vcombine.low %v699_v33, %v703_v47  ;;  %v738_v46 = vcombine.low %v700_v49, %v704_v48  ;;  %v712_v50 = vrot.slane %v705_v36, %v1940_v61  ;;  %v737_v3 = vrot.slane %v730_v26, %v1940_v61 }
 0x2b9   :  { %v720_v1 = vrot.slane %v713_v29, %v1940_v61  ;;  %v745_v16 = vrot.slane %v738_v46, %v1940_v61 }
 0x2bb   :  { %v746_v43 = vcombine.low %v737_v3, %v745_v16  ;;  %v721_v51 = vcombine.low %v712_v50, %v720_v1 }
 0x2bd   :  { %v753_v22 = vrot.slane %v746_v43, %v1944_v24  ;;  %v728_v37 = vrot.slane %v721_v51, %v1944_v24 }
 0x2bf   :  { %v756_v40 = vmul.f32 0.01, %v753_v22  ;;  %v755_v20 = vmul.f32 0.01, %v728_v37  ;;  %v729_v54 = vcombine.high %v728_v37, %v1557_v41  ;;  %v754_v55 = vcombine.high %v753_v22, %v1557_v41 }
 0x2c1   :  { %v2030_v34 = vmax.f32 %v753_v22, %v756_v40  ;;  %v2032_v59 = vmax.f32 %v728_v37, %v755_v20  ;;  %v757_v19 = vmul.f32 0.01, %v729_v54  ;;  %v758_v2 = vmul.f32 0.01, %v754_v55 }
 0x2c3   :  { %767 = vrot.lane.b32.xlu0 %v2030_v34, %s1553_s30  ;;  %765 = vrot.lane.b32.xlu1 %v2032_v59, %s1553_s30  ;;  %v2044_v57 = vmax.f32 %v729_v54, %v757_v19  ;;  %v1444_v30 = vpack.i.bf16 %v2030_v34, %v2032_v59  ;;  %v2052_v0 = vmax.f32 %v754_v55, %v758_v2 }
 0x2c5   :  { %v1454_v60 = vpack.i.bf16 %v2052_v0, %v2044_v57 }
 0x2c7   :  { %777 = vrot.lane.b32.xlu0 %v2032_v59, %s1554_s0  ;;  %779 = vrot.lane.b32.xlu1 %v2030_v34, %s1554_s0 }
 0x2cb   :  { %781 = vrot.lane.b32.xlu0 %v2044_v57, %s1554_s0  ;;  %769 = vrot.lane.b32.xlu1 %v2044_v57, %s1553_s30 }
 0x2cf   :  { %1445 = vrot.lane.b32.xlu0 %v1444_v30, %s1555_s6  ;;  %771 = vrot.lane.b32.xlu1 %v2052_v0, %s1553_s30 }
 0x2d3   :  { %1450 = vrot.lane.b32.xlu0 %v1444_v30, %s1556_s7  ;;  %783 = vrot.lane.b32.xlu1 %v2052_v0, %s1554_s0 }
 0x2d7   :  { %1455 = vrot.lane.b32.xlu1 %v1454_v60, %s1555_s6 }
 0x2db   :  { %1460 = vrot.lane.b32.xlu1 %v1454_v60, %s1556_s7 }
 0x335   :  { %v768_v38 = vpop.permute.xlu0 %767  ;;  %v766_v52 = vpop.permute.xlu1 %765 }
 0x336   :  { %v2098_v25 = vsel %vm2435_vm1, %v766_v52, %v768_v38 }
 0x337   :  { %v898_v40 = vrot.slane %v2098_v25, 4 }
 0x339   :  { %v778_v53 = vpop.permute.xlu0 %777  ;;  %v780_v45 = vpop.permute.xlu1 %779 }
 0x33a   :  { %v2066_v44 = vsel %vm181_vm0, %v778_v53, %v780_v45 }
 0x33b   :  { %861 = vrot.lane.b32.xlu0 %v2066_v44, %s1555_s6 }
 0x33d   :  { %v770_v56 = vpop.permute.xlu1 %769  ;;  %v782_v10 = vpop.permute.xlu0 %781 }
 0x33e   :  { %v774_v28 = vsel %vm2435_vm1, %v768_v38, %v770_v56  ;;  %v786_v18 = vsel %vm181_vm0, %v780_v45, %v782_v10 }
 0x33f   :  { %873 = vrot.lane.b32.xlu0 %v2066_v44, %s1556_s7  ;;  %v2113_v23 = vsel %vm1704_vm4, %v2098_v25, %v786_v18 }
 0x341   :  { %v772_v58 = vpop.permute.xlu1 %771  ;;  %v1446_v35 = vpop.permute.xlu0 %1445 }
 0x342   :  { %v776_v42 = vsel %vm2434_vm7, %v772_v58, %v766_v52  ;;  %v2087_v31 = vsel %vm2436_vm6, %v770_v56, %v772_v58  ;;  %v1448_v50 = vunpack.i.h.bf16 %v1446_v35  ;;  %v1447_v3 = vunpack.i.l.bf16 %v1446_v35 }
 0x343   :  { %v2079_v32 = vsel %vm1671_vm3, %v2066_v44, %v776_v42  ;;  %v900_v20 = vrot.slane %v2087_v31, 4 }
 0x344   :  { %v1464_v14 = vpack.i.bf16 %v2098_v25, %v2079_v32  ;;  %v897_v2 = vrot.slane %v2079_v32, 4 }
 0x345   :  { %v784_v17 = vpop.permute.xlu1 %783  ;;  %v1451_v49 = vpop.permute.xlu0 %1450 }
 0x346   :  { %v2083_v13 = vsel %vm181_vm0, %v782_v10, %v784_v17  ;;  %v788_v6 = vsel %vm181_vm0, %v784_v17, %v778_v53  ;;  %v1453_v1 = vunpack.i.h.bf16 %v1451_v49  ;;  %v1452_v16 = vunpack.i.l.bf16 %v1451_v49 }
 0x347   :  { %v2092_v21 = vsel %vm1656_vm2, %v2083_v13, %v774_v28  ;;  %865 = vrot.lane.b32.xlu0 %v2083_v13, %s1555_s6  ;;  %v2127_v33 = vsel %vm1718_vm5, %v2087_v31, %v788_v6  ;;  %vm2437_vm0 = vcmp.lt.s32.totalorder %v1641_v9, 1  ;;  %vm2438_vm2 = vcmp.lt.s32.totalorder %v1641_v9, 127 }
 0x348   :  { %v1469_v27 = vpack.i.bf16 %v2087_v31, %v2092_v21  ;;  %vm2439_vm3 = vmmov %vm2438_vm2  ;;  %v899_v28 = vrot.slane %v2092_v21, 4 }
 0x349   :  { %v1456_v36 = vpop.permute.xlu1 %1455  ;;  %vm2440_vm4 = vmmov %vm2437_vm0 }
 0x34a   :  { %1470 = vrot.lane.b32.xlu1 %v1469_v27, %s1555_s6  ;;  %v1458_v39 = vunpack.i.h.bf16 %v1456_v36  ;;  %v1457_v51 = vunpack.i.l.bf16 %v1456_v36  ;;  %v839_v55 = vsel %vm2440_vm4, %v1447_v3, %v1448_v50  ;;  %vm2441_vm5 = vmmov %vm2438_vm2 }
 0x34b   :  { %1465 = vrot.lane.b32.xlu0 %v1464_v14, %s1555_s6  ;;  %v851_v30 = vsel %vm2441_vm5, %v1452_v16, %v1453_v1  ;;  %vm2442_vm6 = vmmov %vm2438_vm2 }
 0x34c   :  { %v840_v22 = vsel %vm2437_vm0, %v1458_v39, %v1447_v3  ;;  %vm2443_vm7 = vmmov %vm2437_vm0 }
 0x34d   :  { %v1461_v47 = vpop.permute.xlu1 %1460  ;;  %v853_v52 = vsel %vm1773_vm14, %v851_v30, %v840_v22  ;;  %v2166_v53 = vsel %vm2443_vm7, %v1457_v51, %v1458_v39  ;;  %vm2444_vm1 = vmmov %vm2437_vm0  ;;  %v857_v32 = vsel %vm1769_vm13, %v840_v22, %v851_v30 }
 0x34e   :  { %1480 = vrot.lane.b32.xlu1 %v1469_v27, %s1556_s7  ;;  %v1462_v29 = vunpack.i.l.bf16 %v1461_v47  ;;  %v1463_v46 = vunpack.i.h.bf16 %v1461_v47  ;;  %v2170_v45 = vsel %vm2444_vm1, %v1448_v50, %v1457_v51  ;;  %vm2446_vm4 = vmmov %vm2437_vm0 }
 0x34f   :  { %1475 = vrot.lane.b32.xlu0 %v1464_v14, %s1556_s7  ;;  %v909_v14 = vrot.slane %v853_v52, 4  ;;  %vm2447_vm5 = vmmov %vm2437_vm0 }
 0x350   :  { %v2145_v37 = vsel %vm2438_vm2, %v1453_v1, %v1462_v29  ;;  %v2151_v54 = vsel %vm2439_vm3, %v1462_v29, %v1463_v46  ;;  %v2160_v60 = vsel %vm2442_vm6, %v1463_v46, %v1452_v16  ;;  %vm2445_vm2 = vmmov %vm2437_vm0 }
 0x351   :  { %v854_v56 = vsel %vm1753_vm9, %v2145_v37, %v839_v55  ;;  %v855_v58 = vsel %vm1777_vm15, %v2151_v54, %v2170_v45  ;;  %v856_v31 = vsel %vm1761_vm11, %v2160_v60, %v2166_v53  ;;  %v858_v18 = vsel %vm1757_vm10, %v839_v55, %v2145_v37  ;;  %vm2448_vm6 = vmmov %vm2439_vm3 }
 0x352   :  { %863 = vrot.lane.b32.xlu1 %v2113_v23, %s1555_s6  ;;  %v910_v49 = vrot.slane %v854_v56, 4  ;;  %v911_v21 = vrot.slane %v855_v58, 4  ;;  %v912_v39 = vrot.slane %v856_v31, 4  ;;  %vm2449_vm7 = vmmov %vm2439_vm3 }
 0x353   :  { %877 = vrot.lane.b32.xlu0 %v2083_v13, %s1556_s7  ;;  %vm2450_vm1 = vmmov %vm2439_vm3 }
 0x356   :  { %867 = vrot.lane.b32.xlu1 %v2127_v33, %s1555_s6 }
 0x357   :  { %959 = vperm.xlu0 %1443, %v764_v15  }
 0x35a   :  { %875 = vrot.lane.b32.xlu1 %v2113_v23, %s1556_s7 }
 0x35e   :  { %879 = vrot.lane.b32.xlu1 %v2127_v33, %s1556_s7 }
 0x3ad   :  { %v2135_v26 = vpop.permute.xlu0 %861 }
 0x3b1   :  { %v2137_v48 = vpop.permute.xlu0 %873 }
 0x3b9   :  { %v2139_v43 = vpop.permute.xlu0 %865 }
 0x3bc   :  { %v1471_v19 = vpop.permute.xlu1 %1470 }
 0x3bd   :  { %v1466_v38 = vpop.permute.xlu0 %1465  ;;  %v1473_v42 = vunpack.i.h.bf16 %v1471_v19  ;;  %v1472_v10 = vunpack.i.l.bf16 %v1471_v19 }
 0x3be   :  { %v1468_v17 = vunpack.i.h.bf16 %v1466_v38  ;;  %v1467_v25 = vunpack.i.l.bf16 %v1466_v38 }
 0x3bf   :  { %v805_v29 = vsel %vm2437_vm0, %v1472_v10, %v1473_v42  ;;  %vm2451_vm0 = vcmask 1043456  }
 0x3c0   :  { %v1481_v27 = vpop.permute.xlu1 %1480  ;;  %v806_v46 = vsel %vm2445_vm2, %v1468_v17, %v1472_v10  ;;  %v807_v3 = vsel %vm2446_vm4, %v1467_v25, %v1468_v17  ;;  %v808_v1 = vsel %vm2447_vm5, %v1473_v42, %v1467_v25  ;;  %vm2452_vm2 = vmmov %vm2451_vm0 }
 0x3c1   :  { %v1483_v6 = vunpack.i.h.bf16 %v1481_v27  ;;  %v1482_v15 = vunpack.i.l.bf16 %v1481_v27  ;;  %v1476_v35 = vpop.permute.xlu0 %1475  ;;  %vm2454_vm4 = vmmov %vm2451_vm0 }
 0x3c2   :  { %v1478_v36 = vunpack.i.h.bf16 %v1476_v35  ;;  %v1477_v47 = vunpack.i.l.bf16 %v1476_v35  ;;  %vm2455_vm5 = vmmov %vm2451_vm0 }
 0x3c3   :  { %v817_v50 = vsel %vm2439_vm3, %v1482_v15, %v1483_v6  ;;  %vm2453_vm3 = vmmov %vm2451_vm0 }
 0x3c4   :  { %v818_v16 = vsel %vm2448_vm6, %v1478_v36, %v1482_v15  ;;  %v819_v51 = vsel %vm2449_vm7, %v1477_v47, %v1478_v36  ;;  %v864_v22 = vpop.permute.xlu1 %863  ;;  %v823_v37 = vsel %vm1777_vm15, %v817_v50, %v806_v46  ;;  %v820_v19 = vsel %vm2450_vm1, %v1483_v6, %v1477_v47  ;;  %vm2456_vm6 = vmmov %vm2451_vm0 }
 0x3c5   :  { %v821_v55 = vsel %vm1773_vm14, %v819_v51, %v808_v1  ;;  %v825_v30 = vsel %vm1769_vm13, %v808_v1, %v819_v51  ;;  %v827_v38 = vsel %vm1749_vm8, %v806_v46, %v817_v50  ;;  %v822_v52 = vsel %vm1753_vm9, %v818_v16, %v807_v3  ;;  %vm2457_vm7 = vmmov %vm2451_vm0 }
 0x3c6   :  { %v826_v56 = vsel %vm1757_vm10, %v807_v3, %v818_v16  ;;  %v824_v58 = vsel %vm1761_vm11, %v820_v19, %v805_v29  ;;  %v942_v42 = vsel %vm2451_vm0, %v822_v52, %v898_v40  ;;  %v828_v17 = vsel %vm1765_vm12, %v805_v29, %v820_v19  ;;  %vm2458_vm1 = vmmov %vm2451_vm0 }
 0x3c7   :  { %v946_v10 = vsel %vm2452_vm2, %v826_v56, %v910_v49  ;;  %v944_v31 = vsel %vm2453_vm3, %v824_v58, %v900_v20  ;;  %v948_v6 = vsel %vm2454_vm4, %v828_v17, %v912_v39  ;;  %v941_v15 = vsel %vm2455_vm5, %v821_v55, %v897_v2  ;;  %vm2463_vm5 = vmmov %vm2458_vm1 }
 0x3c8   :  { %v868_v25 = vpop.permute.xlu1 %867  ;;  %v1377_v27 = vpack.c.bf16 %v946_v10, %v942_v42  ;;  %v945_v35 = vsel %vm2456_vm6, %v825_v30, %v909_v14  ;;  %v1385_v36 = vpack.c.bf16 %v948_v6, %v944_v31  ;;  %v921_v46 = vrot.slane %v857_v32, 4  ;;  %v878_v14 = vpop.permute.xlu0 %877  ;;  %vm2464_vm6 = vmmov %vm2458_vm1 }
 0x3c9   :  { %v1379_v47 = vpack.c.bf16 %v945_v35, %v941_v15  ;;  %v943_v40 = vsel %vm2457_vm7, %v823_v37, %v899_v28  ;;  %v947_v49 = vsel %vm2458_vm1, %v827_v38, %v911_v21  ;;  %v859_v20 = vsel %vm1749_vm8, %v2170_v45, %v2151_v54  ;;  %vm2465_vm7 = vmmov %vm2458_vm1 }
 0x3ca   :  { %1378 = vmatprep.subr.bf16.mxu0 %v1377_v27  ;;  %v922_v29 = vrot.slane %v858_v18, 4  ;;  %1386 = vmatprep.subr.bf16.mxu1 %v1385_v36  ;;  %v1387_v39 = vpack.c.bf16 %v947_v49, %v943_v40  ;;  %v933_v2 = vrot.slane %v2066_v44, 4  ;;  %v860_v32 = vsel %vm1765_vm12, %v2166_v53, %v2160_v60 }
 0x3cb   :  { %1380 = vmatpush1.bf16.msra.mxu0 %v1379_v47  ;;  %v934_v28 = vrot.slane %v2113_v23, 4  ;;  %vm2459_vm0 = vcmp.lt.s32.totalorder %v1641_v9, 1  ;;  %vm2461_vm3 = vcmp.lt.s32.totalorder %v1641_v9, 127  ;;  %v923_v53 = vrot.slane %v859_v20, 4 }
 0x3cc   :  { %v876_v21 = vpop.permute.xlu1 %875  ;;  %v871_v50 = vsel %vm2459_vm0, %v2135_v26, %v864_v22  ;;  %vm2460_vm2 = vmmov %vm2459_vm0  ;;  %1388 = vmatpush1.bf16.msra.mxu1 %v1387_v39  ;;  %v949_v18 = vsel %vm2463_vm5, %v2032_v59, %v921_v46  ;;  %v924_v3 = vrot.slane %v860_v32, 4  ;;  %v950_v1 = vsel %vm2465_vm7, %v2030_v34, %v922_v29 }
 0x3cd   :  { %v872_v54 = vsel %vm2460_vm2, %v868_v25, %v2135_v26  ;;  %v882_v44 = vsel %vm2461_vm3, %v876_v21, %v878_v14  ;;  %vm2462_vm4 = vmmov %vm2461_vm3  ;;  %v935_v51 = vrot.slane %v2083_v13, 4  ;;  %v936_v37 = vrot.slane %v2127_v33, 4 }
 0x3ce   :  { %v883_v60 = vsel %vm2462_vm4, %v2137_v48, %v876_v21  ;;  %v886_v45 = vsel %vm1753_vm9, %v882_v44, %v871_v50  ;;  %vm2466_vm9 = vmmov %vm2459_vm0 }
 0x3cf   :  { %v885_v23 = vsel %vm1773_vm14, %v883_v60, %v872_v54  ;;  %v954_v16 = vsel %vm2458_vm1, %v886_v45, %v934_v28  ;;  %v870_v63 = vsel %vm2466_vm9, %v864_v22, %v2139_v43  ;;  %vm2467_vm14 = vmmov %vm2459_vm0  ;;  %v889_v52 = vsel %vm1769_vm13, %v872_v54, %v883_v60 }
 0x3d0   :  { %v953_v26 = vsel %vm2464_vm6, %v885_v23, %v933_v2  ;;  %v880_v19 = vpop.permute.xlu1 %879  ;;  %v1381_v55 = vpack.c.bf16 %v954_v16, %v950_v1  ;;  %v869_v59 = vsel %vm2467_vm14, %v2139_v43, %v868_v25  ;;  %vm2468_vm0 = vmmov %vm2461_vm3  ;;  %v890_v43 = vsel %vm1757_vm10, %v871_v50, %v882_v44 }
 0x3d1   :  { %v1383_v11 = vpack.c.bf16 %v953_v26, %v949_v18  ;;  %v881_v34 = vsel %vm2468_vm0, %v878_v14, %v880_v19  ;;  %vm2469_vm2 = vmmov %vm2468_vm0  ;;  %vm2476_vm10 = vcmask 293888  }
 0x3d2   :  { %v884_v13 = vsel %vm2469_vm2, %v880_v19, %v2137_v48  ;;  %v887_v33 = vsel %vm1777_vm15, %v881_v34, %v870_v63  ;;  %vm2470_vm3 = vmmov %vm2458_vm1  ;;  %1382 = vmatprep.subr.bf16.mxu0 %v1381_v55 }
 0x3d3   :  { %v888_v30 = vsel %vm1761_vm11, %v884_v13, %v869_v59  ;;  %v951_v22 = vsel %vm2470_vm3, %v2044_v57, %v923_v53  ;;  %vm2471_vm4 = vmmov %vm2458_vm1  ;;  %1384 = vmatpush1.bf16.msra.mxu0 %v1383_v11  ;;  %v763_v57 = vld [vmem:[%s2401_s3] sm:$0xf]  ;;  %v892_v4 = vsel %vm1765_vm12, %v869_v59, %v884_v13  ;;  %s1561_s3 = smov [#allocation5]  }
 0x3d4   :  { %v955_v38 = vsel %vm2471_vm4, %v887_v33, %v935_v51  ;;  %vm2472_vm5 = vmmov %vm2458_vm1  ;;  %s1339_s13 = sshll.u32 %s1561_s3, 4  ;;  %s1340_s13 = int_to_ptr.vmem [resolvable:$true] %s1339_s13 }
 0x3d5   :  { %v952_v9 = vsel %vm2472_vm5, %v2052_v0, %v924_v3  ;;  %vm2473_vm6 = vmmov %vm2458_vm1  ;;  %v1391_v12 = vpack.c.bf16 %v955_v38, %v951_v22  ;;  %v891_v0 = vsel %vm1749_vm8, %v870_v63, %v881_v34  ;;  %vm2479_vm8 = vcmask 1041408   ;;  %s1526_s14 = scalar_lea.vmem %s1340_s13, 256  ;;  %p1531_p9 = scmp.lt.s32.totalorder %s1340_s13, %s1340_s13 }
 0x3d6   :  { %v956_v48 = vsel %vm2473_vm6, %v888_v30, %v936_v37  ;;  %vm2474_vm15 = vmmov %vm2458_vm1  ;;  %v960_v58 = vpop.permute.xlu0 %959  ;;  %p1527_p8 = scmp.ne.s32.totalorder %s1340_s13, %s1526_s14  ;;  %p1532_p10 = scmp.lt.s32.totalorder %s1526_s14, %s1526_s14 }
 0x3d7   :  { %1354 = vmatprep.subr.msk.mxu0 %vm2474_vm15, %v890_v43  ;;  %v1389_v5 = vpack.c.bf16 %v956_v48, %v952_v9  ;;  %vm2475_vm11 = vmmov %vm2458_vm1 }
 0x3d8   :  { %1355 = vmatpush1.msk.msra.mxu0 %vm2475_vm11, %v889_v52  ;;  %vm2477_vm7 = vmmov %vm2458_vm1  ;;  %p1533_p11 = por %p1532_p10, %p1531_p9 }
 0x3d9   :  { %1390 = vmatprep.subr.bf16.mxu1 %v1389_v5  ;;  %1356 = vmatmul.mubr.msk.f32.vlgmr.msra.gmra.mrb[2].mxu0 %vm2476_vm10, %v763_v57  ;;  %vm2478_vm9 = vmmov %vm2476_vm10 }
 0x3da   :  { %1392 = vmatpush1.bf16.msra.mxu1 %v1391_v12  ;;  %vm2480_vm12 = vmmov %vm2479_vm8  ;;  %p1534_p12 = pnand %p1533_p11, %p1527_p8 }
 0x3db   :  { %1357 = vmatprep.subr.msk.mxu1 %vm2477_vm7, %v892_v4  ;;  %vm2481_vm13 = vmmov %vm2479_vm8 }
 0x3dc   :  { %vm2482_vm14 = vmmov %vm2479_vm8 }
 0x3dd   :  { %vm2483_vm0 = vmmov %vm2479_vm8 }
 0x3de   :  { %1358 = vmatpush1.msk.msra.mxu1 %vm2458_vm1, %v891_v0  ;;  %vm2484_vm2 = vmmov %vm2483_vm0 }
 0x3df   :  { %1359 = vmatmul.mubr.msk.f32.vlgmr.msra.gmra.mrb[2].mxu1 %vm2478_vm9, %v763_v57  ;;  %vm2485_vm3 = vmmov %vm2483_vm0 }
 0x3e0   :  { %vm2486_vm4 = vmmov %vm2483_vm0 }
 0x3e1   :  { %vm2487_vm5 = vmmov %vm2483_vm0 }
 0x3e2   :  { %vm2488_vm6 = vmmov %vm2483_vm0 }
 0x3e3   :  { %vm2489_vm15 = vmmov %vm2483_vm0 }
 0x3e4   :  { %vm2490_vm11 = vmmov %vm2483_vm0 }
 0x3e5   :  { %vm2491_vm10 = vmmov %vm2483_vm0 }
 0x3e6   :  { %vm2492_vm7 = vmmov %vm2483_vm0 }
 0x3e7   :  { %vm2493_vm1 = vmmov %vm2483_vm0 }
 0x3e8   :  { %vm2494_vm9 = vmmov %vm2483_vm0 }
 0x4ac   :  { %v1043_v8 = vpop.f32.mrb[2].mxu0 }
 0x4ad   :  { %v1045_v56 = vpop.f32.mrb[3].mxu0  ;;  %v1044_v42 = vadd.f32 %v1043_v8, %v960_v58 }
 0x4ae   :  { %v1046_v10 = vadd.f32 %v1045_v56, %v960_v58 }
 0x4af   :  { %v1125_v27 = vrot.slane %v1044_v42, %v1940_v61 }
 0x4b0   :  { %v1157_v62 = vrot.slane %v1046_v10, %v1940_v61 }
 0x4b2   :  { %v1114_v17 = vpop.f32.mrb[2].mxu1 }
 0x4b3   :  { %v1115_v31 = vadd.f32 %v1114_v17, %v960_v58  ;;  %v1116_v7 = vpop.f32.mrb[3].mxu1 }
 0x4b4   :  { %v1117_v25 = vadd.f32 %v1116_v7, %v960_v58 }
 0x4b5   :  { %v1132_v6 = vrot.slane %v1115_v31, %v1940_v61 }
 0x4b6   :  { %v1164_v15 = vrot.slane %v1117_v25, %v1940_v61 }
 0x4b7   :  { %v1133_v35 = vcombine.low %v1125_v27, %v1132_v6  ;;  %v1134_v36 = vcombine.high %v1125_v27, %v1132_v6 }
 0x4b8   :  { %v1165_v47 = vcombine.low %v1157_v62, %v1164_v15  ;;  %v1166_v46 = vcombine.high %v1157_v62, %v1164_v15 }
 0x4b9   :  { %v2305_v40 = vrot.slane %v1133_v35, %v1944_v24  ;;  %v2308_v49 = vrot.slane %v1134_v36, %v1944_v24 }
 0x4ba   :  { %v2311_v20 = vrot.slane %v1165_v47, %v1944_v24  ;;  %v2314_v29 = vrot.slane %v1166_v46, %v1944_v24 }
 0x4bb   :  { %v1193_v39 = vsel %vm2479_vm8, %v2308_v49, 0.0  ;;  %v1183_v2 = vsel %vm2480_vm12, %v2305_v40, 0.0  ;;  %v2322_v32 = vcombine.high %v2308_v49, %v1557_v41  ;;  %v2326_v28 = vcombine.high %v2305_v40, %v1557_v41 }
 0x4bc   :  { %v1194_v14 = vsel %vm2481_vm13, %v2314_v29, 0.0  ;;  %v1184_v21 = vsel %vm2482_vm14, %v2311_v20, 0.0  ;;  %v2334_v50 = vcombine.high %v2314_v29, %v1557_v41  ;;  %v2338_v54 = vcombine.high %v2311_v20, %v1557_v41 }
 0x4bd   :  { %v1195_v44 = vadd.f32 %v1194_v14, %v1193_v39  ;;  %v1185_v60 = vadd.f32 %v1184_v21, %v1183_v2  ;;  %v1198_v53 = vsel %vm2483_vm0, %v2322_v32, 0.0  ;;  %v1188_v23 = vsel %vm2484_vm2, %v2326_v28, 0.0 }
 0x4be   :  { %v1199_v45 = vsel %vm2485_vm3, %v2334_v50, 0.0  ;;  %v1189_v18 = vsel %vm2486_vm4, %v2338_v54, 0.0  ;;  %v1209_v3 = vmul.f32 %v2326_v28, %v2326_v28  ;;  %v1210_v41 = vmul.f32 %v2338_v54, %v2338_v54 }
 0x4bf   :  { %1196 = vadd.xlane.f32.xlu0 %v1195_v44  ;;  %1186 = vadd.xlane.f32.xlu1 %v1185_v60  ;;  %v1207_v26 = vmul.f32 %v2305_v40, %v2305_v40  ;;  %v1200_v1 = vadd.f32 %v1199_v45, %v1198_v53  ;;  %v1190_v16 = vadd.f32 %v1189_v18, %v1188_v23 }
 0x4c0   :  { %v1208_v51 = vmul.f32 %v2311_v20, %v2311_v20  ;;  %v1220_v37 = vsel %vm2487_vm5, %v1209_v3, 0.0  ;;  %v1221_v11 = vsel %vm2488_vm6, %v1210_v41, 0.0  ;;  %v1213_v55 = vmul.f32 %v2322_v32, %v2322_v32 }
 0x4c1   :  { %v1215_v19 = vsel %vm2489_vm15, %v1207_v26, 0.0  ;;  %v1214_v59 = vmul.f32 %v2334_v50, %v2334_v50  ;;  %v1211_v34 = vmul.f32 %v2308_v49, %v2308_v49  ;;  %v1212_v13 = vmul.f32 %v2314_v29, %v2314_v29 }
 0x4c2   :  { %v1216_v63 = vsel %vm2490_vm11, %v1208_v51, 0.0  ;;  %v1222_v33 = vadd.f32 %v1221_v11, %v1220_v37  ;;  %v1230_v22 = vsel %vm2491_vm10, %v1213_v55, 0.0 }
 0x4c3   :  { %1201 = vadd.xlane.f32.xlu1 %v1200_v1  ;;  %1191 = vadd.xlane.f32.xlu0 %v1190_v16  ;;  %v1217_v30 = vadd.f32 %v1216_v63, %v1215_v19  ;;  %v1231_v38 = vsel %vm2492_vm7, %v1214_v59, 0.0  ;;  %v1225_v43 = vsel %vm2493_vm1, %v1211_v34, 0.0  ;;  %v1226_v9 = vsel %vm2494_vm9, %v1212_v13, 0.0 }
 0x4c4   :  { %v1232_v48 = vadd.f32 %v1231_v38, %v1230_v22  ;;  %v1227_v12 = vadd.f32 %v1226_v9, %v1225_v43 }
 0x4c7   :  { %1223 = vadd.xlane.f32.xlu1 %v1222_v33  ;;  %1218 = vadd.xlane.f32.xlu0 %v1217_v30 }
 0x4cb   :  { %1233 = vadd.xlane.f32.xlu1 %v1232_v48  ;;  %1228 = vadd.xlane.f32.xlu0 %v1227_v12 }
 0x54c   :  { %v1197_v5 = vpop.xlane.xlu0 %1196  ;;  %v1187_v57 = vpop.xlane.xlu1 %1186 }
 0x54d   :  { %v1203_v52 = vmul.f32 0.00390625, %v1187_v57  ;;  %v1205_v56 = vmul.f32 0.00390625, %v1197_v5  ;;  %v1502_v5 = vld [vmem:[#allocation2] sm:$0xff] }
 0x54f   :  { %v1239_v42 = vmul.f32 %v1203_v52, %v1203_v52  ;;  %v1241_v15 = vmul.f32 %v1205_v56, %v1205_v56  ;;  %v1251_v1 = vsub.f32 %v2308_v49, %v1205_v56  ;;  %v1252_v16 = vsub.f32 %v2314_v29, %v1205_v56 }
 0x550   :  { %v1202_v4 = vpop.xlane.xlu1 %1201  ;;  %v1192_v0 = vpop.xlane.xlu0 %1191  ;;  %v1247_v51 = vsub.f32 %v2305_v40, %v1203_v52  ;;  %v1248_v37 = vsub.f32 %v2311_v20, %v1203_v52  ;;  %v1503_v52 = vld [vmem:[#allocation2 + $0x8] sm:$0xff] }
 0x551   :  { %v1204_v8 = vmul.f32 0.00390625, %v1192_v0  ;;  %v1206_v17 = vmul.f32 0.00390625, %v1202_v4 }
 0x553   :  { %v1240_v7 = vmul.f32 %v1204_v8, %v1204_v8  ;;  %v1242_v47 = vmul.f32 %v1206_v17, %v1206_v17  ;;  %v1253_v45 = vsub.f32 %v2322_v32, %v1206_v17  ;;  %v1254_v18 = vsub.f32 %v2334_v50, %v1206_v17 }
 0x554   :  { %v1224_v58 = vpop.xlane.xlu1 %1223  ;;  %v1219_v10 = vpop.xlane.xlu0 %1218  ;;  %v1249_v3 = vsub.f32 %v2326_v28, %v1204_v8  ;;  %v1250_v41 = vsub.f32 %v2338_v54, %v1204_v8 }
 0x555   :  { %v1236_v31 = vmul.f32 0.00390625, %v1224_v58  ;;  %v1235_v25 = vmul.f32 0.00390625, %v1219_v10 }
 0x557   :  { %v1244_v27 = vsub.f32 %v1236_v31, %v1240_v7  ;;  %v1243_v6 = vsub.f32 %v1235_v25, %v1239_v42 }
 0x558   :  { %v1234_v62 = vpop.xlane.xlu1 %1233  ;;  %v1229_v35 = vpop.xlane.xlu0 %1228 }
 0x559   :  { %v1256_v36 = vadd.f32 1e-05, %v1244_v27  ;;  %v1238_v46 = vmul.f32 0.00390625, %v1234_v62  ;;  %v1237_v39 = vmul.f32 0.00390625, %v1229_v35  ;;  %v1255_v2 = vadd.f32 1e-05, %v1243_v6 }
 0x55b   :  { %v1246_v14 = vsub.f32 %v1238_v46, %v1242_v47  ;;  %v1245_v21 = vsub.f32 %v1237_v39, %v1241_v15  ;;  %1494 = vrsqrt.f32 %v1256_v36 }
 0x55c   :  { %1496 = vrsqrt.f32 %v1255_v2 }
 0x55d   :  { %v1258_v44 = vadd.f32 1e-05, %v1246_v14  ;;  %v1257_v60 = vadd.f32 1e-05, %v1245_v21 }
 0x55f   :  { %1498 = vrsqrt.f32 %v1258_v44 }
 0x560   :  { %1500 = vrsqrt.f32 %v1257_v60 }
 0x565   :  { %v1495_v53 = vpop.eup %1494 }
 0x566   :  { %v1497_v23 = vpop.eup %1496  ;;  %v1265_v19 = vmul.f32 %v1495_v53, %v1249_v3  ;;  %v1266_v55 = vmul.f32 %v1495_v53, %v1250_v41 }
 0x567   :  { %v1263_v59 = vmul.f32 %v1497_v23, %v1247_v51  ;;  %v1264_v50 = vmul.f32 %v1497_v23, %v1248_v37 }
 0x569   :  { %v1499_v26 = vpop.eup %1498 }
 0x56a   :  { %v1501_v11 = vpop.eup %1500  ;;  %v1269_v63 = vmul.f32 %v1499_v26, %v1253_v45  ;;  %v1270_v32 = vmul.f32 %v1499_v26, %v1254_v18 }
 0x56b   :  { %v1267_v34 = vmul.f32 %v1501_v11, %v1251_v1  ;;  %v1268_v28 = vmul.f32 %v1501_v11, %v1252_v16 }
 0x56c   :  { %v1279_v13 = vcombine.low %v1265_v19, %v1269_v63  ;;  %v1304_v54 = vcombine.low %v1266_v55, %v1270_v32 }
 0x56d   :  { %v1271_v33 = vcombine.low %v1263_v59, %v1267_v34  ;;  %v1296_v30 = vcombine.low %v1264_v50, %v1268_v28 }
 0x56e   :  { %v1286_v49 = vrot.slane %v1279_v13, %v1940_v61  ;;  %v1311_v29 = vrot.slane %v1304_v54, %v1940_v61 }
 0x56f   :  { %v1278_v40 = vrot.slane %v1271_v33, %v1940_v61  ;;  %v1303_v20 = vrot.slane %v1296_v30, %v1940_v61 }
 0x571   :  { %v1287_v22 = vcombine.low %v1278_v40, %v1286_v49  ;;  %v1312_v38 = vcombine.low %v1303_v20, %v1311_v29 }
 0x573   :  { %v1294_v43 = vrot.slane %v1287_v22, %v1944_v24  ;;  %v1319_v9 = vrot.slane %v1312_v38, %v1944_v24 }
 0x575   :  { %v1325_v48 = vcombine.low %v1294_v43, %v1319_v9  ;;  %v1360_v12 = vcombine.high %v1294_v43, %v1319_v9 }
 0x577   :  { %v1329_v57 = vadd.f32 %v1502_v5, %v1325_v48  ;;  %v1330_v4 = vadd.f32 %v1503_v52, %v1360_v12 }
 0x579   :  { %1331 = vst [vmem:[#allocation5] sm:$0xff] %v1329_v57  ;;  %1332 = vst [vmem:[#allocation5 + $0x8] sm:$0xff] %v1330_v4 }
 0x57a   :  { %1537 = shalt.err (!%p1534_p12)
}
 0x57b   :  { %s1538_s17 = scalar_lea.hbm %s2403_s5, 256 }
 0x57c   :  { %p1539_p13 = scmp.ne.s32.totalorder %s2403_s5, %s1538_s17  ;;  %p1542_p0 = scmp.lt.u32.totalorder %s1538_s17, %s2403_s5 }
 0x57e   :  { %p1544_p1 = pnand %p1542_p0, %p1539_p13 }
 0x580   :  { %1547 = shalt.err (!%p1544_p1)
}
 0x581   :  { %1342 = dma.vmem_to_hbm [thread:$0]  %s1340_s13, 256, %s2403_s5, [#allocation4]  }
 0x582   :  { %1550 = dma.done.wait [#allocation4], 256  }
 0x583   :  { %1551 = vsyncadd [#allocation4], 4294967040 }
 0x584   :  { %1346 = vsyncpa [#allocation3], 1 }
 0x585   :  { %1347 = vsyncpa [#allocation4], 1 }

</bundles_post_ra>
